<compile_context>
chip_gen: v5e
topology: v5e:2x2
jax: 0.10.0
libtpu: 0.0.40
codegen_flags: <defaults>
</compile_context>

<pallas_src>
import math

import jax
import jax.numpy as jnp
from jax import lax
from jax.experimental import pallas as pl
from jax.experimental.pallas import tpu as pltpu
from jax.scipy.special import erf as _xla_erf

LANES = 128
SUBLANES = 8
GROUP = SUBLANES * LANES                 # 1024 f32 = one (8,128) vreg
UNROLL = 8                               # inner fori_loop unroll (bg is a multiple of 8)
MAX_BLOCK_GROUPS_STATS = 1024            # 4 MiB f32 per input block (passes 1-2)
MAX_BLOCK_GROUPS_KS = 512                # 2 MiB per input x 4 inputs, double-buffered = 16 MiB
VMEM_LIMIT_BYTES = 40 * 1024 * 1024      # sized off the 4-input KS pass; safe on v7x (64 MiB)

_EPS_F32 = float(jnp.finfo(jnp.float32).eps)   # torchinterp1d uses finfo(y).eps
_SQRT2 = math.sqrt(2.0)

# Module "parameters" (constructor args) — deterministic, set in-script.
KS_STOP = 0.1
KS_FRAC = 0.5
KS_SCALE = 1.0
L1_SCALE = 1.0
# (beta from __init__ is overwritten every forward with 0.1 * targets.max())


def _num_tensorcores():
    """Best-effort TensorCore count (2 on v7x, 1 on v5e/v6e); safe fallback = 1."""
    try:
        info = pltpu.get_tpu_info()
        for name in ("num_cores", "core_count", "num_tensorcores", "tensorcores_per_chip"):
            v = getattr(info, name, None)
            if v:
                return max(int(v), 1)
    except Exception:
        pass
    return 1


NUM_SHARDS = min(max(_num_tensorcores(), 1), 2)


# ---------------------------------------------------------------------------
# geometry helpers (value-neutral padding makes any n legal)
# ---------------------------------------------------------------------------
def _round_up(x, m):
    return ((x + m - 1) // m) * m


def _geometry(n, max_bg):
    """Return (n_padded, groups, shards, block_groups, steps).

    block_groups is always a multiple of UNROLL (=8), so the inner loop unroll
    is fixed and blocks never collapse for awkward (prime / odd) sizes.
    """
    g_min = _round_up(n, GROUP) // GROUP
    shards = NUM_SHARDS if g_min >= NUM_SHARDS * UNROLL else 1
    g_shard = _round_up((g_min + shards - 1) // shards, UNROLL)
    bg = min(max_bg, g_shard)
    steps = (g_shard + bg - 1) // bg
    g = shards * steps * bg
    return g * GROUP, g, shards, bg, steps


def _pad_to(x, total, value):
    n = x.shape[0]
    if total == n:
        return x
    fill = jnp.broadcast_to(value, (total - n,)).astype(x.dtype)
    return jnp.concatenate([x, fill])


def _data_spec(bg, steps):
    # (bg, 8, 128) block; leading grid axis = shard, inner axis = step.
    return pl.BlockSpec((bg, SUBLANES, LANES), lambda s, i, scal: (s * steps + i, 0, 0))


def _part_spec():
    # Per-shard (1, 8, 128) partial output, resident across the inner (arbitrary) axis.
    return pl.BlockSpec((1, SUBLANES, LANES), lambda s, i, scal: (s, 0, 0))


def _compiler_params():
    return pltpu.CompilerParams(
        dimension_semantics=("parallel", "arbitrary"),
        vmem_limit_bytes=VMEM_LIMIT_BYTES,
    )


# ---------------------------------------------------------------------------
# in-kernel math helpers
# ---------------------------------------------------------------------------
def _erf(x):
    # Abramowitz & Stegun 7.1.26, |err| <= 1.5e-7.  Full-precision divide for
    # the rational term: the EUP approx reciprocal (~2^-8..2^-12 rel. error)
    # is NOT accurate enough here and was the source of the previous mismatch.
    a1, a2, a3, a4, a5 = 0.254829592, -0.284496736, 1.421413741, -1.453152027, 1.061405429
    p_c = 0.3275911
    ax = jnp.abs(x)
    t = 1.0 / (1.0 + p_c * ax)
    poly = ((((a5 * t + a4) * t + a3) * t + a2) * t + a1) * t
    y = 1.0 - poly * jnp.exp(-ax * ax)
    return jnp.where(x >= 0, y, -y)
    # TODO(synk): a tanh-based erf would trade ~15 VALU ops for 1 EUP tanh but
    # its ~1e-3 absolute error eats most of the accuracy budget; kept A&S.


# ---------------------------------------------------------------------------
# Kernel 1: target statistics — shifted sum / shifted sumsq / max
# ---------------------------------------------------------------------------
def _target_stats_kernel(scal_ref, t_ref, sum_ref, sumsq_ref, max_ref):
    step = pl.program_id(1)

    @pl.when(step == 0)
    def _():
        sum_ref[...] = jnp.zeros(sum_ref.shape, jnp.float32)
        sumsq_ref[...] = jnp.zeros(sumsq_ref.shape, jnp.float32)
        max_ref[...] = jnp.full(max_ref.shape, -jnp.inf, jnp.float32)

    c = scal_ref[0]
    bg = t_ref.shape[0]

    def body(k, carry):
        s, ss, mx = carry
        x = t_ref[k]                       # (8, 128) f32 — one vreg
        xc = x - c
        return s + xc, ss + xc * xc, jnp.maximum(mx, x)

    zero = jnp.zeros((SUBLANES, LANES), jnp.float32)
    ninf = jnp.full((SUBLANES, LANES), -jnp.inf, jnp.float32)
    s, ss, mx = lax.fori_loop(0, bg, body, (zero, zero, ninf), unroll=UNROLL)

    sum_ref[0] += s
    sumsq_ref[0] += ss
    max_ref[0] = jnp.maximum(max_ref[0], mx)


def _call_target_stats(scal, t3d, shards, bg, steps, n_pad):
    part = jax.ShapeDtypeStruct((shards, SUBLANES, LANES), jnp.float32)
    return pl.pallas_call(
        _target_stats_kernel,
        out_shape=(part, part, part),
        grid_spec=pltpu.PrefetchScalarGridSpec(
            num_scalar_prefetch=1,
            grid=(shards, steps),
            in_specs=[_data_spec(bg, steps)],                     # targets
            out_specs=[_part_spec(), _part_spec(), _part_spec()],
        ),
        compiler_params=_compiler_params(),
        cost_estimate=pl.CostEstimate(
            flops=5 * n_pad, transcendentals=0,
            bytes_accessed=4 * n_pad + 3 * shards * GROUP * 4),
    )(scal, t3d)


# ---------------------------------------------------------------------------
# Kernel 2 (fused): prediction statistics + Smooth-L1 sum
# ---------------------------------------------------------------------------
def _pred_stats_l1_kernel(scal_ref, p_ref, t_ref, sum_ref, sumsq_ref, l1_ref):
    step = pl.program_id(1)

    @pl.when(step == 0)
    def _():
        sum_ref[...] = jnp.zeros(sum_ref.shape, jnp.float32)
        sumsq_ref[...] = jnp.zeros(sumsq_ref.shape, jnp.float32)
        l1_ref[...] = jnp.zeros(l1_ref.shape, jnp.float32)

    beta = scal_ref[0]
    half_beta = scal_ref[1]     # 0.5 * beta     (hoisted to wrapper)
    inv_2beta = scal_ref[2]     # 0.5 / beta     (hoisted to wrapper)
    c_p = scal_ref[3]           # variance shift
    bg = p_ref.shape[0]

    def body(k, carry):
        s, ss, sl1 = carry
        p = p_ref[k]
        t = t_ref[k]
        diff = p - t
        adiff = jnp.abs(diff)
        l1 = jnp.where(adiff < beta, (diff * diff) * inv_2beta, adiff - half_beta)
        pc = p - c_p
        return s + pc, ss + pc * pc, sl1 + l1

    zero = jnp.zeros((SUBLANES, LANES), jnp.float32)
    s, ss, sl1 = lax.fori_loop(0, bg, body, (zero, zero, zero), unroll=UNROLL)

    sum_ref[0] += s
    sumsq_ref[0] += ss
    l1_ref[0] += sl1


def _call_pred_stats_l1(scal, p3d, t3d, shards, bg, steps, n_pad):
    part = jax.ShapeDtypeStruct((shards, SUBLANES, LANES), jnp.float32)
    return pl.pallas_call(
        _pred_stats_l1_kernel,
        out_shape=(part, part, part),
        grid_spec=pltpu.PrefetchScalarGridSpec(
            num_scalar_prefetch=1,
            grid=(shards, steps),
            in_specs=[_data_spec(bg, steps),                      # predictions
                      _data_spec(bg, steps)],                     # targets
            out_specs=[_part_spec(), _part_spec(), _part_spec()],
        ),
        compiler_params=_compiler_params(),
        cost_estimate=pl.CostEstimate(
            flops=10 * n_pad, transcendentals=0,
            bytes_accessed=8 * n_pad + 3 * shards * GROUP * 4),
    )(scal, p3d, t3d)


# ---------------------------------------------------------------------------
# Kernel 3: KS statistic (erf space, 1 erf/elem, no in-kernel division)
#   d = | erf((vals-mean_t)/(std_t*sqrt2)) - (e0 + slope_e*(vals - x0)) |
#   ks = 0.5 * max d        (scaling back from erf space done in the wrapper)
# where e0 / slope_e are built from the exactly-precomputed prediction CDF.
# ---------------------------------------------------------------------------
def _ks_kernel(scal_ref, vals_ref, x0_ref, e0_ref, slope_ref, max_ref):
    step = pl.program_id(1)

    @pl.when(step == 0)
    def _():
        max_ref[...] = jnp.full(max_ref.shape, -jnp.inf, jnp.float32)

    mean_t = scal_ref[0]
    coef_t = scal_ref[1]        # 1 / (std_t * sqrt(2))
    bg = vals_ref.shape[0]

    def body(k, mx):
        vals = vals_ref[k]
        e_t = _erf((vals - mean_t) * coef_t)
        interp = e0_ref[k] + slope_ref[k] * (vals - x0_ref[k])
        return jnp.maximum(mx, jnp.abs(e_t - interp))

    ninf = jnp.full((SUBLANES, LANES), -jnp.inf, jnp.float32)
    mx = lax.fori_loop(0, bg, body, ninf, unroll=UNROLL)
    max_ref[0] = jnp.maximum(max_ref[0], mx)


def _call_ks_max(scal, vals3d, x0_3d, e0_3d, slope_3d, shards, bg, steps, n_pad):
    part = jax.ShapeDtypeStruct((shards, SUBLANES, LANES), jnp.float32)
    return pl.pallas_call(
        _ks_kernel,
        out_shape=part,
        grid_spec=pltpu.PrefetchScalarGridSpec(
            num_scalar_prefetch=1,
            grid=(shards, steps),
            in_specs=[_data_spec(bg, steps),                      # sorted targets
                      _data_spec(bg, steps),                      # x0 endpoints
                      _data_spec(bg, steps),                      # erf-space pred CDF at x0
                      _data_spec(bg, steps)],                     # erf-space slope
            out_specs=_part_spec(),
        ),
        compiler_params=_compiler_params(),
        cost_estimate=pl.CostEstimate(
            flops=30 * n_pad, transcendentals=n_pad,
            bytes_accessed=16 * n_pad + shards * GROUP * 4),
    )(scal, vals3d, x0_3d, e0_3d, slope_3d)


# ---------------------------------------------------------------------------
# Wrapper: full SmoothL1_KSLoss.forward semantics (loss value + stop flag)
# ---------------------------------------------------------------------------
def smooth_l1_ks_loss(predictions, targets, ks_frac=KS_FRAC,
                      ks_scale=KS_SCALE, l1_scale=L1_SCALE):
    p_flat = predictions.reshape(-1).astype(jnp.float32)
    t_flat = targets.reshape(-1).astype(jnp.float32)
    n = p_flat.shape[0]
    nf = jnp.float32(n)

    # Shift constants for numerically-stable single-pass variance (shifted sums);
    # also used as value-neutral pad fills.
    c_t = t_flat[0]
    c_p = p_flat[0]

    n_pad, g, shards, bg, steps = _geometry(n, MAX_BLOCK_GROUPS_STATS)
    t3d = _pad_to(t_flat, n_pad, c_t).reshape(g, SUBLANES, LANES)
    p3d = _pad_to(p_flat, n_pad, c_p).reshape(g, SUBLANES, LANES)

    # --- pass 1: target statistics (Pallas) ---
    ps_t, pss_t, pmax_t = _call_target_stats(
        jnp.reshape(c_t, (1,)), t3d, shards, bg, steps, n_pad)
    s1_t = jnp.sum(ps_t)
    s2_t = jnp.sum(pss_t)
    max_t = jnp.max(pmax_t)
    mean_t = c_t + s1_t / nf
    # torch Tensor.std() is the unbiased estimator (ddof=1)
    var_t = jnp.maximum(s2_t - s1_t * s1_t / nf, 0.0) / (nf - 1.0)
    std_t = jnp.sqrt(var_t)
    beta = 0.1 * max_t
    half_beta = 0.5 * beta
    inv_2beta = 0.5 / beta
    # TODO(synk): torch's mask*(0.5*diff**2/beta) yields NaN when beta <= 0
    # (all-nonpositive targets); that degenerate edge case is not reproduced.

    # --- pass 2 (fused): prediction statistics + Smooth-L1 sum (Pallas) ---
    scal2 = jnp.stack([beta, half_beta, inv_2beta, c_p]).astype(jnp.float32)
    ps_p, pss_p, pl1 = _call_pred_stats_l1(scal2, p3d, t3d, shards, bg, steps, n_pad)
    s1_p = jnp.sum(ps_p)
    s2_p = jnp.sum(pss_p)
    mean_p = c_p + s1_p / nf
    var_p = jnp.maximum(s2_p - s1_p * s1_p / nf, 0.0) / (nf - 1.0)
    std_p = jnp.sqrt(var_p)
    # subtract the (exact, identical-formula) contribution of the pad elements
    d_pad = c_p - c_t
    ad_pad = jnp.abs(d_pad)
    l1_pad = jnp.where(ad_pad < beta, (d_pad * d_pad) * inv_2beta, ad_pad - half_beta)
    l1_mean = (jnp.sum(pl1) - jnp.float32(n_pad - n) * l1_pad) / nf
    # TODO(synk): shifted sums accumulate in f32; for n >> 1e8 consider Kahan.

    # --- pass 3: KS statistic ---
    # TODO(synk): sort / searchsorted / gather have no clean Pallas TPU
    # equivalent; they stay in XLA (they dominate wall time for small n).
    vals = jnp.sort(t_flat)
    vals_pred = jnp.sort(p_flat)
    # Prediction-side CDF precomputed ONCE in XLA (erf space = 2*Phi - 1) and
    # gathered at the interpolation endpoints; slope computed exactly here.
    # The KS kernel then does 1 erf/elem (vs 3) and carries no division.
    # TODO(synk): on v5e a window-DMA of sorted_preds (ind is nondecreasing)
    # could avoid materializing x0/e0/slope entirely; not done here.
    erf_pred = _xla_erf((vals_pred - mean_p) / (std_p * jnp.float32(_SQRT2)))
    ind = jnp.clip(jnp.searchsorted(vals_pred, vals, side="left") - 1, 0, n - 2)
    x0 = vals_pred[ind]
    x1 = vals_pred[ind + 1]
    e0 = erf_pred[ind]
    e1 = erf_pred[ind + 1]
    slope_e = (e1 - e0) / (jnp.float32(_EPS_F32) + (x1 - x0))

    nk_pad, gk, ks_shards, ks_bg, ks_steps = _geometry(n, MAX_BLOCK_GROUPS_KS)
    # edge padding: padded rows reproduce the last real row's |cdf - interp|
    vals3d = _pad_to(vals, nk_pad, vals[-1]).reshape(gk, SUBLANES, LANES)
    x0_3d = _pad_to(x0, nk_pad, x0[-1]).reshape(gk, SUBLANES, LANES)
    e0_3d = _pad_to(e0, nk_pad, e0[-1]).reshape(gk, SUBLANES, LANES)
    sl_3d = _pad_to(slope_e, nk_pad, slope_e[-1]).reshape(gk, SUBLANES, LANES)

    scal3 = jnp.stack([mean_t, 1.0 / (std_t * jnp.float32(_SQRT2))]).astype(jnp.float32)
    pks = _call_ks_max(scal3, vals3d, x0_3d, e0_3d, sl_3d,
                       ks_shards, ks_bg, ks_steps, nk_pad)
    ks_loss = 0.5 * jnp.max(pks)      # erf-space max -> CDF-space KS statistic

    l1_frac = 1.0 - ks_frac
    loss = l1_frac * l1_mean * l1_scale + ks_frac * ks_loss * ks_scale

    # TODO(synk): the PyTorch module's stateful bookkeeping (first_iter max-loss
    # prints, per-batch loss logs written to *_l1ks_log.txt, and the ks_stop
    # early-stopping flag) is host-side I/O / Python state with no Pallas
    # equivalent; the returned `stop` is the default False of a fresh module.
    stop = jnp.array(False)
    return loss, stop


# ---------------------------------------------------------------------------
# Pure-JAX reference (mirrors the torch math) for a sanity check.
# ---------------------------------------------------------------------------
def _reference_loss(pred, targ, ks_frac=KS_FRAC, ks_scale=KS_SCALE, l1_scale=L1_SCALE):
    p = pred.reshape(-1).astype(jnp.float32)
    t = targ.reshape(-1).astype(jnp.float32)
    n = p.shape[0]
    beta = 0.1 * jnp.max(t)
    diff = p - t
    mask = jnp.abs(diff) < beta
    l1 = jnp.where(mask, 0.5 * diff * diff / beta, jnp.abs(diff) - 0.5 * beta)
    l1_mean = jnp.mean(l1)
    mean_t, std_t = jnp.mean(t), jnp.std(t, ddof=1)
    mean_p, std_p = jnp.mean(p), jnp.std(p, ddof=1)
    cdf_fn = lambda x, m, s: 0.5 * (1.0 + _xla_erf((x - m) / (s * jnp.sqrt(2.0))))
    vals = jnp.sort(t)
    vals_pred = jnp.sort(p)
    cdf = cdf_fn(vals, mean_t, std_t)
    cdf_pred = cdf_fn(vals_pred, mean_p, std_p)
    ind = jnp.clip(jnp.searchsorted(vals_pred, vals, side="left") - 1, 0, n - 2)
    slope = (cdf_pred[ind + 1] - cdf_pred[ind]) / (_EPS_F32 + vals_pred[ind + 1] - vals_pred[ind])
    interp = cdf_pred[ind] + slope * (vals - vals_pred[ind])
    ks = jnp.max(jnp.abs(cdf - interp))
    return (1.0 - ks_frac) * l1_mean * l1_scale + ks_frac * ks * ks_scale


if __name__ == "__main__":
    key = jax.random.PRNGKey(0)
    kp, kt = jax.random.split(key)
    # NCHW like the PyTorch estimator (batch=2, channels=4, 16x16 spatial)
    predictions = jax.random.normal(kp, (2, 4, 16, 16), dtype=jnp.float32)
    targets = jax.random.normal(kt, (2, 4, 16, 16), dtype=jnp.float32) * 0.9 + 0.05

    loss_fn = jax.jit(smooth_l1_ks_loss)
    loss, stop = loss_fn(predictions, targets)
    loss = jax.block_until_ready(loss)

    ref = jax.block_until_ready(_reference_loss(predictions, targets))
    # expected agreement ~1e-6 now (A&S erf only on the target CDF, everything
    # else exact); tolerance kept loose for safety.
    assert jnp.allclose(loss, ref, rtol=2e-3, atol=1e-4), (float(loss), float(ref))
    assert not bool(stop)

    print("KERNEL_OK")
</pallas_src>

<mosaic_0001>
module attributes {stable_mosaic.version = 11 : i64} {
  func.func @_target_stats_kernel(%arg0: i32, %arg1: i32, %arg2: memref<1xf32, #tpu.memory_space<smem>>, %arg3: memref<8x8x128xf32, #tpu.memory_space<vmem>>, %arg4: memref<1x8x128xf32, #tpu.memory_space<vmem>>, %arg5: memref<1x8x128xf32, #tpu.memory_space<vmem>>, %arg6: memref<1x8x128xf32, #tpu.memory_space<vmem>>) attributes {dimension_semantics = [#tpu.dimension_semantics<parallel>, #tpu.dimension_semantics<arbitrary>], iteration_bounds = array<i64: 1, 1>, scalar_prefetch = 1 : i64, scratch_operands = 0 : i64, tpu.core_type = #tpu.core_type<tc>, window_params = [{transform_indices = @transform_0, window_bounds = array<i64: 8, 8, 128>}, {transform_indices = @transform_1, window_bounds = array<i64: 1, 8, 128>}, {transform_indices = @transform_2, window_bounds = array<i64: 1, 8, 128>}, {transform_indices = @transform_3, window_bounds = array<i64: 1, 8, 128>}]} {
    %c0_i32 = arith.constant 0 : i32
    %0 = arith.cmpi eq, %arg1, %c0_i32 : i32
    %1 = arith.extui %0 : i1 to i32
    %c0_i32_0 = arith.constant 0 : i32
    %2 = arith.cmpi ne, %1, %c0_i32_0 : i32
    scf.if %2 {
      %cst_37 = arith.constant 0.000000e+00 : f32
      %96 = vector.broadcast %cst_37 : f32 to vector<1x8x128xf32>
      %c0_38 = arith.constant 0 : index
      %c0_39 = arith.constant 0 : index
      %c0_40 = arith.constant 0 : index
      %97 = vector.load %arg4[%c0_38, %c0_39, %c0_40] : memref<1x8x128xf32, #tpu.memory_space<vmem>>, vector<1x8x128xf32>
      tpu.vector_store %arg4[%c0_38, %c0_39, %c0_40], %96 {strides = array<i32>} : memref<1x8x128xf32, #tpu.memory_space<vmem>>, vector<1x8x128xf32>,
      %cst_41 = arith.constant 0.000000e+00 : f32
      %98 = vector.broadcast %cst_41 : f32 to vector<1x8x128xf32>
      %c0_42 = arith.constant 0 : index
      %c0_43 = arith.constant 0 : index
      %c0_44 = arith.constant 0 : index
      %99 = vector.load %arg5[%c0_42, %c0_43, %c0_44] : memref<1x8x128xf32, #tpu.memory_space<vmem>>, vector<1x8x128xf32>
      tpu.vector_store %arg5[%c0_42, %c0_43, %c0_44], %98 {strides = array<i32>} : memref<1x8x128xf32, #tpu.memory_space<vmem>>, vector<1x8x128xf32>,
      %cst_45 = arith.constant 0xFF800000 : f32
      %100 = vector.broadcast %cst_45 : f32 to vector<1x8x128xf32>
      %c0_46 = arith.constant 0 : index
      %c0_47 = arith.constant 0 : index
      %c0_48 = arith.constant 0 : index
      %101 = vector.load %arg6[%c0_46, %c0_47, %c0_48] : memref<1x8x128xf32, #tpu.memory_space<vmem>>, vector<1x8x128xf32>
      tpu.vector_store %arg6[%c0_46, %c0_47, %c0_48], %100 {strides = array<i32>} : memref<1x8x128xf32, #tpu.memory_space<vmem>>, vector<1x8x128xf32>,
    } else {
    }
    %c0 = arith.constant 0 : index
    %3 = memref.load %arg2[%c0] : memref<1xf32, #tpu.memory_space<smem>>
    %cst = arith.constant 0.000000e+00 : f32
    %4 = vector.broadcast %cst : f32 to vector<8x128xf32>
    %cst_1 = arith.constant 0xFF800000 : f32
    %5 = vector.broadcast %cst_1 : f32 to vector<8x128xf32>
    %c0_i32_2 = arith.constant 0 : i32
    %6 = arith.index_cast %c0_i32_2 : i32 to index
    %c0_3 = arith.constant 0 : index
    %c0_4 = arith.constant 0 : index
    %7 = vector.load %arg3[%6, %c0_3, %c0_4] : memref<8x8x128xf32, #tpu.memory_space<vmem>>, vector<1x8x128xf32>
    %8 = vector.shape_cast %7 : vector<1x8x128xf32> to vector<8x128xf32>
    %9 = vector.broadcast %3 : f32 to vector<8x128xf32>
    %10 = arith.subf %8, %9 : vector<8x128xf32>
    %11 = arith.addf %4, %10 : vector<8x128xf32>
    %12 = arith.mulf %10, %10 : vector<8x128xf32>
    %13 = arith.addf %4, %12 : vector<8x128xf32>
    %14 = arith.maximumf %5, %8 : vector<8x128xf32>
    %c1_i32 = arith.constant 1 : i32
    %15 = arith.index_cast %c1_i32 : i32 to index
    %c0_5 = arith.constant 0 : index
    %c0_6 = arith.constant 0 : index
    %16 = vector.load %arg3[%15, %c0_5, %c0_6] : memref<8x8x128xf32, #tpu.memory_space<vmem>>, vector<1x8x128xf32>
    %17 = vector.shape_cast %16 : vector<1x8x128xf32> to vector<8x128xf32>
    %18 = vector.broadcast %3 : f32 to vector<8x128xf32>
    %19 = arith.subf %17, %18 : vector<8x128xf32>
    %20 = arith.addf %11, %19 : vector<8x128xf32>
    %21 = arith.mulf %19, %19 : vector<8x128xf32>
    %22 = arith.addf %13, %21 : vector<8x128xf32>
    %23 = arith.maximumf %14, %17 : vector<8x128xf32>
    %c2_i32 = arith.constant 2 : i32
    %24 = arith.index_cast %c2_i32 : i32 to index
    %c0_7 = arith.constant 0 : index
    %c0_8 = arith.constant 0 : index
    %25 = vector.load %arg3[%24, %c0_7, %c0_8] : memref<8x8x128xf32, #tpu.memory_space<vmem>>, vector<1x8x128xf32>
    %26 = vector.shape_cast %25 : vector<1x8x128xf32> to vector<8x128xf32>
    %27 = vector.broadcast %3 : f32 to vector<8x128xf32>
    %28 = arith.subf %26, %27 : vector<8x128xf32>
    %29 = arith.addf %20, %28 : vector<8x128xf32>
    %30 = arith.mulf %28, %28 : vector<8x128xf32>
    %31 = arith.addf %22, %30 : vector<8x128xf32>
    %32 = arith.maximumf %23, %26 : vector<8x128xf32>
    %c3_i32 = arith.constant 3 : i32
    %33 = arith.index_cast %c3_i32 : i32 to index
    %c0_9 = arith.constant 0 : index
    %c0_10 = arith.constant 0 : index
    %34 = vector.load %arg3[%33, %c0_9, %c0_10] : memref<8x8x128xf32, #tpu.memory_space<vmem>>, vector<1x8x128xf32>
    %35 = vector.shape_cast %34 : vector<1x8x128xf32> to vector<8x128xf32>
    %36 = vector.broadcast %3 : f32 to vector<8x128xf32>
    %37 = arith.subf %35, %36 : vector<8x128xf32>
    %38 = arith.addf %29, %37 : vector<8x128xf32>
    %39 = arith.mulf %37, %37 : vector<8x128xf32>
    %40 = arith.addf %31, %39 : vector<8x128xf32>
    %41 = arith.maximumf %32, %35 : vector<8x128xf32>
    %c4_i32 = arith.constant 4 : i32
    %42 = arith.index_cast %c4_i32 : i32 to index
    %c0_11 = arith.constant 0 : index
    %c0_12 = arith.constant 0 : index
    %43 = vector.load %arg3[%42, %c0_11, %c0_12] : memref<8x8x128xf32, #tpu.memory_space<vmem>>, vector<1x8x128xf32>
    %44 = vector.shape_cast %43 : vector<1x8x128xf32> to vector<8x128xf32>
    %45 = vector.broadcast %3 : f32 to vector<8x128xf32>
    %46 = arith.subf %44, %45 : vector<8x128xf32>
    %47 = arith.addf %38, %46 : vector<8x128xf32>
    %48 = arith.mulf %46, %46 : vector<8x128xf32>
    %49 = arith.addf %40, %48 : vector<8x128xf32>
    %50 = arith.maximumf %41, %44 : vector<8x128xf32>
    %c5_i32 = arith.constant 5 : i32
    %51 = arith.index_cast %c5_i32 : i32 to index
    %c0_13 = arith.constant 0 : index
    %c0_14 = arith.constant 0 : index
    %52 = vector.load %arg3[%51, %c0_13, %c0_14] : memref<8x8x128xf32, #tpu.memory_space<vmem>>, vector<1x8x128xf32>
    %53 = vector.shape_cast %52 : vector<1x8x128xf32> to vector<8x128xf32>
    %54 = vector.broadcast %3 : f32 to vector<8x128xf32>
    %55 = arith.subf %53, %54 : vector<8x128xf32>
    %56 = arith.addf %47, %55 : vector<8x128xf32>
    %57 = arith.mulf %55, %55 : vector<8x128xf32>
    %58 = arith.addf %49, %57 : vector<8x128xf32>
    %59 = arith.maximumf %50, %53 : vector<8x128xf32>
    %c6_i32 = arith.constant 6 : i32
    %60 = arith.index_cast %c6_i32 : i32 to index
    %c0_15 = arith.constant 0 : index
    %c0_16 = arith.constant 0 : index
    %61 = vector.load %arg3[%60, %c0_15, %c0_16] : memref<8x8x128xf32, #tpu.memory_space<vmem>>, vector<1x8x128xf32>
    %62 = vector.shape_cast %61 : vector<1x8x128xf32> to vector<8x128xf32>
    %63 = vector.broadcast %3 : f32 to vector<8x128xf32>
    %64 = arith.subf %62, %63 : vector<8x128xf32>
    %65 = arith.addf %56, %64 : vector<8x128xf32>
    %66 = arith.mulf %64, %64 : vector<8x128xf32>
    %67 = arith.addf %58, %66 : vector<8x128xf32>
    %68 = arith.maximumf %59, %62 : vector<8x128xf32>
    %c7_i32 = arith.constant 7 : i32
    %69 = arith.index_cast %c7_i32 : i32 to index
    %c0_17 = arith.constant 0 : index
    %c0_18 = arith.constant 0 : index
    %70 = vector.load %arg3[%69, %c0_17, %c0_18] : memref<8x8x128xf32, #tpu.memory_space<vmem>>, vector<1x8x128xf32>
    %71 = vector.shape_cast %70 : vector<1x8x128xf32> to vector<8x128xf32>
    %72 = vector.broadcast %3 : f32 to vector<8x128xf32>
    %73 = arith.subf %71, %72 : vector<8x128xf32>
    %74 = arith.addf %65, %73 : vector<8x128xf32>
    %75 = arith.mulf %73, %73 : vector<8x128xf32>
    %76 = arith.addf %67, %75 : vector<8x128xf32>
    %77 = arith.maximumf %68, %71 : vector<8x128xf32>
    %c8_i32 = arith.constant 8 : i32
    %c0_19 = arith.constant 0 : index
    %c0_20 = arith.constant 0 : index
    %c0_21 = arith.constant 0 : index
    %78 = vector.load %arg4[%c0_19, %c0_20, %c0_21] : memref<1x8x128xf32, #tpu.memory_space<vmem>>, vector<1x8x128xf32>
    %79 = vector.shape_cast %78 : vector<1x8x128xf32> to vector<8x128xf32>
    %80 = arith.addf %79, %74 : vector<8x128xf32>
    %c0_22 = arith.constant 0 : index
    %c0_23 = arith.constant 0 : index
    %c0_24 = arith.constant 0 : index
    %81 = vector.load %arg4[%c0_22, %c0_23, %c0_24] : memref<1x8x128xf32, #tpu.memory_space<vmem>>, vector<1x8x128xf32>
    %82 = vector.shape_cast %81 : vector<1x8x128xf32> to vector<8x128xf32>
    %83 = vector.shape_cast %80 : vector<8x128xf32> to vector<1x8x128xf32>
    tpu.vector_store %arg4[%c0_22, %c0_23, %c0_24], %83 {strides = array<i32>} : memref<1x8x128xf32, #tpu.memory_space<vmem>>, vector<1x8x128xf32>,
    %c0_25 = arith.constant 0 : index
    %c0_26 = arith.constant 0 : index
    %c0_27 = arith.constant 0 : index
    %84 = vector.load %arg5[%c0_25, %c0_26, %c0_27] : memref<1x8x128xf32, #tpu.memory_space<vmem>>, vector<1x8x128xf32>
    %85 = vector.shape_cast %84 : vector<1x8x128xf32> to vector<8x128xf32>
    %86 = arith.addf %85, %76 : vector<8x128xf32>
    %c0_28 = arith.constant 0 : index
    %c0_29 = arith.constant 0 : index
    %c0_30 = arith.constant 0 : index
    %87 = vector.load %arg5[%c0_28, %c0_29, %c0_30] : memref<1x8x128xf32, #tpu.memory_space<vmem>>, vector<1x8x128xf32>
    %88 = vector.shape_cast %87 : vector<1x8x128xf32> to vector<8x128xf32>
    %89 = vector.shape_cast %86 : vector<8x128xf32> to vector<1x8x128xf32>
    tpu.vector_store %arg5[%c0_28, %c0_29, %c0_30], %89 {strides = array<i32>} : memref<1x8x128xf32, #tpu.memory_space<vmem>>, vector<1x8x128xf32>,
    %c0_31 = arith.constant 0 : index
    %c0_32 = arith.constant 0 : index
    %c0_33 = arith.constant 0 : index
    %90 = vector.load %arg6[%c0_31, %c0_32, %c0_33] : memref<1x8x128xf32, #tpu.memory_space<vmem>>, vector<1x8x128xf32>
    %91 = vector.shape_cast %90 : vector<1x8x128xf32> to vector<8x128xf32>
    %92 = arith.maximumf %91, %77 : vector<8x128xf32>
    %c0_34 = arith.constant 0 : index
    %c0_35 = arith.constant 0 : index
    %c0_36 = arith.constant 0 : index
    %93 = vector.load %arg6[%c0_34, %c0_35, %c0_36] : memref<1x8x128xf32, #tpu.memory_space<vmem>>, vector<1x8x128xf32>
    %94 = vector.shape_cast %93 : vector<1x8x128xf32> to vector<8x128xf32>
    %95 = vector.shape_cast %92 : vector<8x128xf32> to vector<1x8x128xf32>
    tpu.vector_store %arg6[%c0_34, %c0_35, %c0_36], %95 {strides = array<i32>} : memref<1x8x128xf32, #tpu.memory_space<vmem>>, vector<1x8x128xf32>,
    return
  }
  func.func @transform_0(%arg0: i32, %arg1: i32, %arg2: memref<1xf32, #tpu.memory_space<smem>>) -> (i32, i32, i32) {
    %c1_i32 = arith.constant 1 : i32
    %0 = arith.muli %arg0, %c1_i32 : i32
    %1 = arith.addi %0, %arg1 : i32
    %c0_i32 = arith.constant 0 : i32
    %c0_i32_0 = arith.constant 0 : i32
    %c0_i32_1 = arith.constant 0 : i32
    return %1, %c0_i32, %c0_i32_0 : i32, i32, i32
  }
  func.func @transform_1(%arg0: i32, %arg1: i32, %arg2: memref<1xf32, #tpu.memory_space<smem>>) -> (i32, i32, i32) {
    %c0_i32 = arith.constant 0 : i32
    %c0_i32_0 = arith.constant 0 : i32
    %c0_i32_1 = arith.constant 0 : i32
    return %arg0, %c0_i32, %c0_i32_0 : i32, i32, i32
  }
  func.func @transform_2(%arg0: i32, %arg1: i32, %arg2: memref<1xf32, #tpu.memory_space<smem>>) -> (i32, i32, i32) {
    %c0_i32 = arith.constant 0 : i32
    %c0_i32_0 = arith.constant 0 : i32
    %c0_i32_1 = arith.constant 0 : i32
    return %arg0, %c0_i32, %c0_i32_0 : i32, i32, i32
  }
  func.func @transform_3(%arg0: i32, %arg1: i32, %arg2: memref<1xf32, #tpu.memory_space<smem>>) -> (i32, i32, i32) {
    %c0_i32 = arith.constant 0 : i32
    %c0_i32_0 = arith.constant 0 : i32
    %c0_i32_1 = arith.constant 0 : i32
    return %arg0, %c0_i32, %c0_i32_0 : i32, i32, i32
  }
}

module attributes {stable_mosaic.version = 11 : i64} {
  func.func @_pred_stats_l1_kernel(%arg0: i32, %arg1: i32, %arg2: memref<4xf32, #tpu.memory_space<smem>>, %arg3: memref<8x8x128xf32, #tpu.memory_space<vmem>>, %arg4: memref<8x8x128xf32, #tpu.memory_space<vmem>>, %arg5: memref<1x8x128xf32, #tpu.memory_space<vmem>>, %arg6: memref<1x8x128xf32, #tpu.memory_space<vmem>>, %arg7: memref<1x8x128xf32, #tpu.memory_space<vmem>>) attributes {dimension_semantics = [#tpu.dimension_semantics<parallel>, #tpu.dimension_semantics<arbitrary>], iteration_bounds = array<i64: 1, 1>, scalar_prefetch = 1 : i64, scratch_operands = 0 : i64, tpu.core_type = #tpu.core_type<tc>, window_params = [{transform_indices = @transform_0, window_bounds = array<i64: 8, 8, 128>}, {transform_indices = @transform_1, window_bounds = array<i64: 8, 8, 128>}, {transform_indices = @transform_2, window_bounds = array<i64: 1, 8, 128>}, {transform_indices = @transform_3, window_bounds = array<i64: 1, 8, 128>}, {transform_indices = @transform_4, window_bounds = array<i64: 1, 8, 128>}]} {
    %c0_i32 = arith.constant 0 : i32
    %0 = arith.cmpi eq, %arg1, %c0_i32 : i32
    %1 = arith.extui %0 : i1 to i32
    %c0_i32_0 = arith.constant 0 : i32
    %2 = arith.cmpi ne, %1, %c0_i32_0 : i32
    scf.if %2 {
      %cst_52 = arith.constant 0.000000e+00 : f32
      %202 = vector.broadcast %cst_52 : f32 to vector<1x8x128xf32>
      %c0_53 = arith.constant 0 : index
      %c0_54 = arith.constant 0 : index
      %c0_55 = arith.constant 0 : index
      %203 = vector.load %arg5[%c0_53, %c0_54, %c0_55] : memref<1x8x128xf32, #tpu.memory_space<vmem>>, vector<1x8x128xf32>
      tpu.vector_store %arg5[%c0_53, %c0_54, %c0_55], %202 {strides = array<i32>} : memref<1x8x128xf32, #tpu.memory_space<vmem>>, vector<1x8x128xf32>,
      %cst_56 = arith.constant 0.000000e+00 : f32
      %204 = vector.broadcast %cst_56 : f32 to vector<1x8x128xf32>
      %c0_57 = arith.constant 0 : index
      %c0_58 = arith.constant 0 : index
      %c0_59 = arith.constant 0 : index
      %205 = vector.load %arg6[%c0_57, %c0_58, %c0_59] : memref<1x8x128xf32, #tpu.memory_space<vmem>>, vector<1x8x128xf32>
      tpu.vector_store %arg6[%c0_57, %c0_58, %c0_59], %204 {strides = array<i32>} : memref<1x8x128xf32, #tpu.memory_space<vmem>>, vector<1x8x128xf32>,
      %cst_60 = arith.constant 0.000000e+00 : f32
      %206 = vector.broadcast %cst_60 : f32 to vector<1x8x128xf32>
      %c0_61 = arith.constant 0 : index
      %c0_62 = arith.constant 0 : index
      %c0_63 = arith.constant 0 : index
      %207 = vector.load %arg7[%c0_61, %c0_62, %c0_63] : memref<1x8x128xf32, #tpu.memory_space<vmem>>, vector<1x8x128xf32>
      tpu.vector_store %arg7[%c0_61, %c0_62, %c0_63], %206 {strides = array<i32>} : memref<1x8x128xf32, #tpu.memory_space<vmem>>, vector<1x8x128xf32>,
    } else {
    }
    %c0 = arith.constant 0 : index
    %3 = memref.load %arg2[%c0] : memref<4xf32, #tpu.memory_space<smem>>
    %c1 = arith.constant 1 : index
    %4 = memref.load %arg2[%c1] : memref<4xf32, #tpu.memory_space<smem>>
    %c2 = arith.constant 2 : index
    %5 = memref.load %arg2[%c2] : memref<4xf32, #tpu.memory_space<smem>>
    %c3 = arith.constant 3 : index
    %6 = memref.load %arg2[%c3] : memref<4xf32, #tpu.memory_space<smem>>
    %cst = arith.constant 0.000000e+00 : f32
    %7 = vector.broadcast %cst : f32 to vector<8x128xf32>
    %c0_i32_1 = arith.constant 0 : i32
    %8 = arith.index_cast %c0_i32_1 : i32 to index
    %c0_2 = arith.constant 0 : index
    %c0_3 = arith.constant 0 : index
    %9 = vector.load %arg3[%8, %c0_2, %c0_3] : memref<8x8x128xf32, #tpu.memory_space<vmem>>, vector<1x8x128xf32>
    %10 = vector.shape_cast %9 : vector<1x8x128xf32> to vector<8x128xf32>
    %11 = arith.index_cast %c0_i32_1 : i32 to index
    %c0_4 = arith.constant 0 : index
    %c0_5 = arith.constant 0 : index
    %12 = vector.load %arg4[%11, %c0_4, %c0_5] : memref<8x8x128xf32, #tpu.memory_space<vmem>>, vector<1x8x128xf32>
    %13 = vector.shape_cast %12 : vector<1x8x128xf32> to vector<8x128xf32>
    %14 = arith.subf %10, %13 : vector<8x128xf32>
    %15 = math.absf %14 : vector<8x128xf32>
    %16 = vector.broadcast %3 : f32 to vector<8x128xf32>
    %17 = arith.cmpf olt, %15, %16 : vector<8x128xf32>
    %18 = arith.mulf %14, %14 : vector<8x128xf32>
    %19 = vector.broadcast %5 : f32 to vector<8x128xf32>
    %20 = arith.mulf %18, %19 : vector<8x128xf32>
    %21 = vector.broadcast %4 : f32 to vector<8x128xf32>
    %22 = arith.subf %15, %21 : vector<8x128xf32>
    %23 = arith.select %17, %20, %22 : vector<8x128xi1>, vector<8x128xf32>
    %24 = vector.broadcast %6 : f32 to vector<8x128xf32>
    %25 = arith.subf %10, %24 : vector<8x128xf32>
    %26 = arith.addf %7, %25 : vector<8x128xf32>
    %27 = arith.mulf %25, %25 : vector<8x128xf32>
    %28 = arith.addf %7, %27 : vector<8x128xf32>
    %29 = arith.addf %7, %23 : vector<8x128xf32>
    %c1_i32 = arith.constant 1 : i32
    %30 = arith.index_cast %c1_i32 : i32 to index
    %c0_6 = arith.constant 0 : index
    %c0_7 = arith.constant 0 : index
    %31 = vector.load %arg3[%30, %c0_6, %c0_7] : memref<8x8x128xf32, #tpu.memory_space<vmem>>, vector<1x8x128xf32>
    %32 = vector.shape_cast %31 : vector<1x8x128xf32> to vector<8x128xf32>
    %33 = arith.index_cast %c1_i32 : i32 to index
    %c0_8 = arith.constant 0 : index
    %c0_9 = arith.constant 0 : index
    %34 = vector.load %arg4[%33, %c0_8, %c0_9] : memref<8x8x128xf32, #tpu.memory_space<vmem>>, vector<1x8x128xf32>
    %35 = vector.shape_cast %34 : vector<1x8x128xf32> to vector<8x128xf32>
    %36 = arith.subf %32, %35 : vector<8x128xf32>
    %37 = math.absf %36 : vector<8x128xf32>
    %38 = vector.broadcast %3 : f32 to vector<8x128xf32>
    %39 = arith.cmpf olt, %37, %38 : vector<8x128xf32>
    %40 = arith.mulf %36, %36 : vector<8x128xf32>
    %41 = vector.broadcast %5 : f32 to vector<8x128xf32>
    %42 = arith.mulf %40, %41 : vector<8x128xf32>
    %43 = vector.broadcast %4 : f32 to vector<8x128xf32>
    %44 = arith.subf %37, %43 : vector<8x128xf32>
    %45 = arith.select %39, %42, %44 : vector<8x128xi1>, vector<8x128xf32>
    %46 = vector.broadcast %6 : f32 to vector<8x128xf32>
    %47 = arith.subf %32, %46 : vector<8x128xf32>
    %48 = arith.addf %26, %47 : vector<8x128xf32>
    %49 = arith.mulf %47, %47 : vector<8x128xf32>
    %50 = arith.addf %28, %49 : vector<8x128xf32>
    %51 = arith.addf %29, %45 : vector<8x128xf32>
    %c2_i32 = arith.constant 2 : i32
    %52 = arith.index_cast %c2_i32 : i32 to index
    %c0_10 = arith.constant 0 : index
    %c0_11 = arith.constant 0 : index
    %53 = vector.load %arg3[%52, %c0_10, %c0_11] : memref<8x8x128xf32, #tpu.memory_space<vmem>>, vector<1x8x128xf32>
    %54 = vector.shape_cast %53 : vector<1x8x128xf32> to vector<8x128xf32>
    %55 = arith.index_cast %c2_i32 : i32 to index
    %c0_12 = arith.constant 0 : index
    %c0_13 = arith.constant 0 : index
    %56 = vector.load %arg4[%55, %c0_12, %c0_13] : memref<8x8x128xf32, #tpu.memory_space<vmem>>, vector<1x8x128xf32>
    %57 = vector.shape_cast %56 : vector<1x8x128xf32> to vector<8x128xf32>
    %58 = arith.subf %54, %57 : vector<8x128xf32>
    %59 = math.absf %58 : vector<8x128xf32>
    %60 = vector.broadcast %3 : f32 to vector<8x128xf32>
    %61 = arith.cmpf olt, %59, %60 : vector<8x128xf32>
    %62 = arith.mulf %58, %58 : vector<8x128xf32>
    %63 = vector.broadcast %5 : f32 to vector<8x128xf32>
    %64 = arith.mulf %62, %63 : vector<8x128xf32>
    %65 = vector.broadcast %4 : f32 to vector<8x128xf32>
    %66 = arith.subf %59, %65 : vector<8x128xf32>
    %67 = arith.select %61, %64, %66 : vector<8x128xi1>, vector<8x128xf32>
    %68 = vector.broadcast %6 : f32 to vector<8x128xf32>
    %69 = arith.subf %54, %68 : vector<8x128xf32>
    %70 = arith.addf %48, %69 : vector<8x128xf32>
    %71 = arith.mulf %69, %69 : vector<8x128xf32>
    %72 = arith.addf %50, %71 : vector<8x128xf32>
    %73 = arith.addf %51, %67 : vector<8x128xf32>
    %c3_i32 = arith.constant 3 : i32
    %74 = arith.index_cast %c3_i32 : i32 to index
    %c0_14 = arith.constant 0 : index
    %c0_15 = arith.constant 0 : index
    %75 = vector.load %arg3[%74, %c0_14, %c0_15] : memref<8x8x128xf32, #tpu.memory_space<vmem>>, vector<1x8x128xf32>
    %76 = vector.shape_cast %75 : vector<1x8x128xf32> to vector<8x128xf32>
    %77 = arith.index_cast %c3_i32 : i32 to index
    %c0_16 = arith.constant 0 : index
    %c0_17 = arith.constant 0 : index
    %78 = vector.load %arg4[%77, %c0_16, %c0_17] : memref<8x8x128xf32, #tpu.memory_space<vmem>>, vector<1x8x128xf32>
    %79 = vector.shape_cast %78 : vector<1x8x128xf32> to vector<8x128xf32>
    %80 = arith.subf %76, %79 : vector<8x128xf32>
    %81 = math.absf %80 : vector<8x128xf32>
    %82 = vector.broadcast %3 : f32 to vector<8x128xf32>
    %83 = arith.cmpf olt, %81, %82 : vector<8x128xf32>
    %84 = arith.mulf %80, %80 : vector<8x128xf32>
    %85 = vector.broadcast %5 : f32 to vector<8x128xf32>
    %86 = arith.mulf %84, %85 : vector<8x128xf32>
    %87 = vector.broadcast %4 : f32 to vector<8x128xf32>
    %88 = arith.subf %81, %87 : vector<8x128xf32>
    %89 = arith.select %83, %86, %88 : vector<8x128xi1>, vector<8x128xf32>
    %90 = vector.broadcast %6 : f32 to vector<8x128xf32>
    %91 = arith.subf %76, %90 : vector<8x128xf32>
    %92 = arith.addf %70, %91 : vector<8x128xf32>
    %93 = arith.mulf %91, %91 : vector<8x128xf32>
    %94 = arith.addf %72, %93 : vector<8x128xf32>
    %95 = arith.addf %73, %89 : vector<8x128xf32>
    %c4_i32 = arith.constant 4 : i32
    %96 = arith.index_cast %c4_i32 : i32 to index
    %c0_18 = arith.constant 0 : index
    %c0_19 = arith.constant 0 : index
    %97 = vector.load %arg3[%96, %c0_18, %c0_19] : memref<8x8x128xf32, #tpu.memory_space<vmem>>, vector<1x8x128xf32>
    %98 = vector.shape_cast %97 : vector<1x8x128xf32> to vector<8x128xf32>
    %99 = arith.index_cast %c4_i32 : i32 to index
    %c0_20 = arith.constant 0 : index
    %c0_21 = arith.constant 0 : index
    %100 = vector.load %arg4[%99, %c0_20, %c0_21] : memref<8x8x128xf32, #tpu.memory_space<vmem>>, vector<1x8x128xf32>
    %101 = vector.shape_cast %100 : vector<1x8x128xf32> to vector<8x128xf32>
    %102 = arith.subf %98, %101 : vector<8x128xf32>
    %103 = math.absf %102 : vector<8x128xf32>
    %104 = vector.broadcast %3 : f32 to vector<8x128xf32>
    %105 = arith.cmpf olt, %103, %104 : vector<8x128xf32>
    %106 = arith.mulf %102, %102 : vector<8x128xf32>
    %107 = vector.broadcast %5 : f32 to vector<8x128xf32>
    %108 = arith.mulf %106, %107 : vector<8x128xf32>
    %109 = vector.broadcast %4 : f32 to vector<8x128xf32>
    %110 = arith.subf %103, %109 : vector<8x128xf32>
    %111 = arith.select %105, %108, %110 : vector<8x128xi1>, vector<8x128xf32>
    %112 = vector.broadcast %6 : f32 to vector<8x128xf32>
    %113 = arith.subf %98, %112 : vector<8x128xf32>
    %114 = arith.addf %92, %113 : vector<8x128xf32>
    %115 = arith.mulf %113, %113 : vector<8x128xf32>
    %116 = arith.addf %94, %115 : vector<8x128xf32>
    %117 = arith.addf %95, %111 : vector<8x128xf32>
    %c5_i32 = arith.constant 5 : i32
    %118 = arith.index_cast %c5_i32 : i32 to index
    %c0_22 = arith.constant 0 : index
    %c0_23 = arith.constant 0 : index
    %119 = vector.load %arg3[%118, %c0_22, %c0_23] : memref<8x8x128xf32, #tpu.memory_space<vmem>>, vector<1x8x128xf32>
    %120 = vector.shape_cast %119 : vector<1x8x128xf32> to vector<8x128xf32>
    %121 = arith.index_cast %c5_i32 : i32 to index
    %c0_24 = arith.constant 0 : index
    %c0_25 = arith.constant 0 : index
    %122 = vector.load %arg4[%121, %c0_24, %c0_25] : memref<8x8x128xf32, #tpu.memory_space<vmem>>, vector<1x8x128xf32>
    %123 = vector.shape_cast %122 : vector<1x8x128xf32> to vector<8x128xf32>
    %124 = arith.subf %120, %123 : vector<8x128xf32>
    %125 = math.absf %124 : vector<8x128xf32>
    %126 = vector.broadcast %3 : f32 to vector<8x128xf32>
    %127 = arith.cmpf olt, %125, %126 : vector<8x128xf32>
    %128 = arith.mulf %124, %124 : vector<8x128xf32>
    %129 = vector.broadcast %5 : f32 to vector<8x128xf32>
    %130 = arith.mulf %128, %129 : vector<8x128xf32>
    %131 = vector.broadcast %4 : f32 to vector<8x128xf32>
    %132 = arith.subf %125, %131 : vector<8x128xf32>
    %133 = arith.select %127, %130, %132 : vector<8x128xi1>, vector<8x128xf32>
    %134 = vector.broadcast %6 : f32 to vector<8x128xf32>
    %135 = arith.subf %120, %134 : vector<8x128xf32>
    %136 = arith.addf %114, %135 : vector<8x128xf32>
    %137 = arith.mulf %135, %135 : vector<8x128xf32>
    %138 = arith.addf %116, %137 : vector<8x128xf32>
    %139 = arith.addf %117, %133 : vector<8x128xf32>
    %c6_i32 = arith.constant 6 : i32
    %140 = arith.index_cast %c6_i32 : i32 to index
    %c0_26 = arith.constant 0 : index
    %c0_27 = arith.constant 0 : index
    %141 = vector.load %arg3[%140, %c0_26, %c0_27] : memref<8x8x128xf32, #tpu.memory_space<vmem>>, vector<1x8x128xf32>
    %142 = vector.shape_cast %141 : vector<1x8x128xf32> to vector<8x128xf32>
    %143 = arith.index_cast %c6_i32 : i32 to index
    %c0_28 = arith.constant 0 : index
    %c0_29 = arith.constant 0 : index
    %144 = vector.load %arg4[%143, %c0_28, %c0_29] : memref<8x8x128xf32, #tpu.memory_space<vmem>>, vector<1x8x128xf32>
    %145 = vector.shape_cast %144 : vector<1x8x128xf32> to vector<8x128xf32>
    %146 = arith.subf %142, %145 : vector<8x128xf32>
    %147 = math.absf %146 : vector<8x128xf32>
    %148 = vector.broadcast %3 : f32 to vector<8x128xf32>
    %149 = arith.cmpf olt, %147, %148 : vector<8x128xf32>
    %150 = arith.mulf %146, %146 : vector<8x128xf32>
    %151 = vector.broadcast %5 : f32 to vector<8x128xf32>
    %152 = arith.mulf %150, %151 : vector<8x128xf32>
    %153 = vector.broadcast %4 : f32 to vector<8x128xf32>
    %154 = arith.subf %147, %153 : vector<8x128xf32>
    %155 = arith.select %149, %152, %154 : vector<8x128xi1>, vector<8x128xf32>
    %156 = vector.broadcast %6 : f32 to vector<8x128xf32>
    %157 = arith.subf %142, %156 : vector<8x128xf32>
    %158 = arith.addf %136, %157 : vector<8x128xf32>
    %159 = arith.mulf %157, %157 : vector<8x128xf32>
    %160 = arith.addf %138, %159 : vector<8x128xf32>
    %161 = arith.addf %139, %155 : vector<8x128xf32>
    %c7_i32 = arith.constant 7 : i32
    %162 = arith.index_cast %c7_i32 : i32 to index
    %c0_30 = arith.constant 0 : index
    %c0_31 = arith.constant 0 : index
    %163 = vector.load %arg3[%162, %c0_30, %c0_31] : memref<8x8x128xf32, #tpu.memory_space<vmem>>, vector<1x8x128xf32>
    %164 = vector.shape_cast %163 : vector<1x8x128xf32> to vector<8x128xf32>
    %165 = arith.index_cast %c7_i32 : i32 to index
    %c0_32 = arith.constant 0 : index
    %c0_33 = arith.constant 0 : index
    %166 = vector.load %arg4[%165, %c0_32, %c0_33] : memref<8x8x128xf32, #tpu.memory_space<vmem>>, vector<1x8x128xf32>
    %167 = vector.shape_cast %166 : vector<1x8x128xf32> to vector<8x128xf32>
    %168 = arith.subf %164, %167 : vector<8x128xf32>
    %169 = math.absf %168 : vector<8x128xf32>
    %170 = vector.broadcast %3 : f32 to vector<8x128xf32>
    %171 = arith.cmpf olt, %169, %170 : vector<8x128xf32>
    %172 = arith.mulf %168, %168 : vector<8x128xf32>
    %173 = vector.broadcast %5 : f32 to vector<8x128xf32>
    %174 = arith.mulf %172, %173 : vector<8x128xf32>
    %175 = vector.broadcast %4 : f32 to vector<8x128xf32>
    %176 = arith.subf %169, %175 : vector<8x128xf32>
    %177 = arith.select %171, %174, %176 : vector<8x128xi1>, vector<8x128xf32>
    %178 = vector.broadcast %6 : f32 to vector<8x128xf32>
    %179 = arith.subf %164, %178 : vector<8x128xf32>
    %180 = arith.addf %158, %179 : vector<8x128xf32>
    %181 = arith.mulf %179, %179 : vector<8x128xf32>
    %182 = arith.addf %160, %181 : vector<8x128xf32>
    %183 = arith.addf %161, %177 : vector<8x128xf32>
    %c8_i32 = arith.constant 8 : i32
    %c0_34 = arith.constant 0 : index
    %c0_35 = arith.constant 0 : index
    %c0_36 = arith.constant 0 : index
    %184 = vector.load %arg5[%c0_34, %c0_35, %c0_36] : memref<1x8x128xf32, #tpu.memory_space<vmem>>, vector<1x8x128xf32>
    %185 = vector.shape_cast %184 : vector<1x8x128xf32> to vector<8x128xf32>
    %186 = arith.addf %185, %180 : vector<8x128xf32>
    %c0_37 = arith.constant 0 : index
    %c0_38 = arith.constant 0 : index
    %c0_39 = arith.constant 0 : index
    %187 = vector.load %arg5[%c0_37, %c0_38, %c0_39] : memref<1x8x128xf32, #tpu.memory_space<vmem>>, vector<1x8x128xf32>
    %188 = vector.shape_cast %187 : vector<1x8x128xf32> to vector<8x128xf32>
    %189 = vector.shape_cast %186 : vector<8x128xf32> to vector<1x8x128xf32>
    tpu.vector_store %arg5[%c0_37, %c0_38, %c0_39], %189 {strides = array<i32>} : memref<1x8x128xf32, #tpu.memory_space<vmem>>, vector<1x8x128xf32>,
    %c0_40 = arith.constant 0 : index
    %c0_41 = arith.constant 0 : index
    %c0_42 = arith.constant 0 : index
    %190 = vector.load %arg6[%c0_40, %c0_41, %c0_42] : memref<1x8x128xf32, #tpu.memory_space<vmem>>, vector<1x8x128xf32>
    %191 = vector.shape_cast %190 : vector<1x8x128xf32> to vector<8x128xf32>
    %192 = arith.addf %191, %182 : vector<8x128xf32>
    %c0_43 = arith.constant 0 : index
    %c0_44 = arith.constant 0 : index
    %c0_45 = arith.constant 0 : index
    %193 = vector.load %arg6[%c0_43, %c0_44, %c0_45] : memref<1x8x128xf32, #tpu.memory_space<vmem>>, vector<1x8x128xf32>
    %194 = vector.shape_cast %193 : vector<1x8x128xf32> to vector<8x128xf32>
    %195 = vector.shape_cast %192 : vector<8x128xf32> to vector<1x8x128xf32>
    tpu.vector_store %arg6[%c0_43, %c0_44, %c0_45], %195 {strides = array<i32>} : memref<1x8x128xf32, #tpu.memory_space<vmem>>, vector<1x8x128xf32>,
    %c0_46 = arith.constant 0 : index
    %c0_47 = arith.constant 0 : index
    %c0_48 = arith.constant 0 : index
    %196 = vector.load %arg7[%c0_46, %c0_47, %c0_48] : memref<1x8x128xf32, #tpu.memory_space<vmem>>, vector<1x8x128xf32>
    %197 = vector.shape_cast %196 : vector<1x8x128xf32> to vector<8x128xf32>
    %198 = arith.addf %197, %183 : vector<8x128xf32>
    %c0_49 = arith.constant 0 : index
    %c0_50 = arith.constant 0 : index
    %c0_51 = arith.constant 0 : index
    %199 = vector.load %arg7[%c0_49, %c0_50, %c0_51] : memref<1x8x128xf32, #tpu.memory_space<vmem>>, vector<1x8x128xf32>
    %200 = vector.shape_cast %199 : vector<1x8x128xf32> to vector<8x128xf32>
    %201 = vector.shape_cast %198 : vector<8x128xf32> to vector<1x8x128xf32>
    tpu.vector_store %arg7[%c0_49, %c0_50, %c0_51], %201 {strides = array<i32>} : memref<1x8x128xf32, #tpu.memory_space<vmem>>, vector<1x8x128xf32>,
    return
  }
  func.func @transform_0(%arg0: i32, %arg1: i32, %arg2: memref<4xf32, #tpu.memory_space<smem>>) -> (i32, i32, i32) {
    %c1_i32 = arith.constant 1 : i32
    %0 = arith.muli %arg0, %c1_i32 : i32
    %1 = arith.addi %0, %arg1 : i32
    %c0_i32 = arith.constant 0 : i32
    %c0_i32_0 = arith.constant 0 : i32
    %c0_i32_1 = arith.constant 0 : i32
    return %1, %c0_i32, %c0_i32_0 : i32, i32, i32
  }
  func.func @transform_1(%arg0: i32, %arg1: i32, %arg2: memref<4xf32, #tpu.memory_space<smem>>) -> (i32, i32, i32) {
    %c1_i32 = arith.constant 1 : i32
    %0 = arith.muli %arg0, %c1_i32 : i32
    %1 = arith.addi %0, %arg1 : i32
    %c0_i32 = arith.constant 0 : i32
    %c0_i32_0 = arith.constant 0 : i32
    %c0_i32_1 = arith.constant 0 : i32
    return %1, %c0_i32, %c0_i32_0 : i32, i32, i32
  }
  func.func @transform_2(%arg0: i32, %arg1: i32, %arg2: memref<4xf32, #tpu.memory_space<smem>>) -> (i32, i32, i32) {
    %c0_i32 = arith.constant 0 : i32
    %c0_i32_0 = arith.constant 0 : i32
    %c0_i32_1 = arith.constant 0 : i32
    return %arg0, %c0_i32, %c0_i32_0 : i32, i32, i32
  }
  func.func @transform_3(%arg0: i32, %arg1: i32, %arg2: memref<4xf32, #tpu.memory_space<smem>>) -> (i32, i32, i32) {
    %c0_i32 = arith.constant 0 : i32
    %c0_i32_0 = arith.constant 0 : i32
    %c0_i32_1 = arith.constant 0 : i32
    return %arg0, %c0_i32, %c0_i32_0 : i32, i32, i32
  }
  func.func @transform_4(%arg0: i32, %arg1: i32, %arg2: memref<4xf32, #tpu.memory_space<smem>>) -> (i32, i32, i32) {
    %c0_i32 = arith.constant 0 : i32
    %c0_i32_0 = arith.constant 0 : i32
    %c0_i32_1 = arith.constant 0 : i32
    return %arg0, %c0_i32, %c0_i32_0 : i32, i32, i32
  }
}

module attributes {stable_mosaic.version = 11 : i64} {
  func.func @_ks_kernel(%arg0: i32, %arg1: i32, %arg2: memref<2xf32, #tpu.memory_space<smem>>, %arg3: memref<8x8x128xf32, #tpu.memory_space<vmem>>, %arg4: memref<8x8x128xf32, #tpu.memory_space<vmem>>, %arg5: memref<8x8x128xf32, #tpu.memory_space<vmem>>, %arg6: memref<8x8x128xf32, #tpu.memory_space<vmem>>, %arg7: memref<1x8x128xf32, #tpu.memory_space<vmem>>) attributes {dimension_semantics = [#tpu.dimension_semantics<parallel>, #tpu.dimension_semantics<arbitrary>], iteration_bounds = array<i64: 1, 1>, scalar_prefetch = 1 : i64, scratch_operands = 0 : i64, tpu.core_type = #tpu.core_type<tc>, window_params = [{transform_indices = @transform_0, window_bounds = array<i64: 8, 8, 128>}, {transform_indices = @transform_1, window_bounds = array<i64: 8, 8, 128>}, {transform_indices = @transform_2, window_bounds = array<i64: 8, 8, 128>}, {transform_indices = @transform_3, window_bounds = array<i64: 8, 8, 128>}, {transform_indices = @transform_4, window_bounds = array<i64: 1, 8, 128>}]} {
    %c0_i32 = arith.constant 0 : i32
    %0 = arith.cmpi eq, %arg1, %c0_i32 : i32
    %1 = arith.extui %0 : i1 to i32
    %c0_i32_0 = arith.constant 0 : i32
    %2 = arith.cmpi ne, %1, %c0_i32_0 : i32
    scf.if %2 {
      %cst_168 = arith.constant 0xFF800000 : f32
      %452 = vector.broadcast %cst_168 : f32 to vector<1x8x128xf32>
      %c0_169 = arith.constant 0 : index
      %c0_170 = arith.constant 0 : index
      %c0_171 = arith.constant 0 : index
      %453 = vector.load %arg7[%c0_169, %c0_170, %c0_171] : memref<1x8x128xf32, #tpu.memory_space<vmem>>, vector<1x8x128xf32>
      tpu.vector_store %arg7[%c0_169, %c0_170, %c0_171], %452 {strides = array<i32>} : memref<1x8x128xf32, #tpu.memory_space<vmem>>, vector<1x8x128xf32>,
    } else {
    }
    %c0 = arith.constant 0 : index
    %3 = memref.load %arg2[%c0] : memref<2xf32, #tpu.memory_space<smem>>
    %c1 = arith.constant 1 : index
    %4 = memref.load %arg2[%c1] : memref<2xf32, #tpu.memory_space<smem>>
    %cst = arith.constant 0xFF800000 : f32
    %5 = vector.broadcast %cst : f32 to vector<8x128xf32>
    %c0_i32_1 = arith.constant 0 : i32
    %6 = arith.index_cast %c0_i32_1 : i32 to index
    %c0_2 = arith.constant 0 : index
    %c0_3 = arith.constant 0 : index
    %7 = vector.load %arg3[%6, %c0_2, %c0_3] : memref<8x8x128xf32, #tpu.memory_space<vmem>>, vector<1x8x128xf32>
    %8 = vector.shape_cast %7 : vector<1x8x128xf32> to vector<8x128xf32>
    %9 = vector.broadcast %3 : f32 to vector<8x128xf32>
    %10 = arith.subf %8, %9 : vector<8x128xf32>
    %11 = vector.broadcast %4 : f32 to vector<8x128xf32>
    %12 = arith.mulf %10, %11 : vector<8x128xf32>
    %13 = math.absf %12 : vector<8x128xf32>
    %cst_4 = arith.constant 0.327591091 : f32
    %14 = vector.broadcast %cst_4 : f32 to vector<8x128xf32>
    %15 = arith.mulf %14, %13 : vector<8x128xf32>
    %cst_5 = arith.constant 1.000000e+00 : f32
    %16 = vector.broadcast %cst_5 : f32 to vector<8x128xf32>
    %17 = arith.addf %16, %15 : vector<8x128xf32>
    %cst_6 = arith.constant 1.000000e+00 : f32
    %18 = vector.broadcast %cst_6 : f32 to vector<8x128xf32>
    %19 = arith.divf %18, %17 : vector<8x128xf32>
    %cst_7 = arith.constant 1.06140542 : f32
    %20 = vector.broadcast %cst_7 : f32 to vector<8x128xf32>
    %21 = arith.mulf %20, %19 : vector<8x128xf32>
    %cst_8 = arith.constant -1.45315206 : f32
    %22 = vector.broadcast %cst_8 : f32 to vector<8x128xf32>
    %23 = arith.addf %21, %22 : vector<8x128xf32>
    %24 = arith.mulf %23, %19 : vector<8x128xf32>
    %cst_9 = arith.constant 1.42141378 : f32
    %25 = vector.broadcast %cst_9 : f32 to vector<8x128xf32>
    %26 = arith.addf %24, %25 : vector<8x128xf32>
    %27 = arith.mulf %26, %19 : vector<8x128xf32>
    %cst_10 = arith.constant -0.284496725 : f32
    %28 = vector.broadcast %cst_10 : f32 to vector<8x128xf32>
    %29 = arith.addf %27, %28 : vector<8x128xf32>
    %30 = arith.mulf %29, %19 : vector<8x128xf32>
    %cst_11 = arith.constant 0.254829586 : f32
    %31 = vector.broadcast %cst_11 : f32 to vector<8x128xf32>
    %32 = arith.addf %30, %31 : vector<8x128xf32>
    %33 = arith.mulf %32, %19 : vector<8x128xf32>
    %cst_12 = arith.constant 0.000000e+00 : f32
    %34 = vector.broadcast %cst_12 : f32 to vector<8x128xf32>
    %35 = arith.subf %34, %13 : vector<8x128xf32>
    %36 = arith.mulf %35, %13 : vector<8x128xf32>
    %37 = math.exp %36 : vector<8x128xf32>
    %38 = arith.mulf %33, %37 : vector<8x128xf32>
    %cst_13 = arith.constant 1.000000e+00 : f32
    %39 = vector.broadcast %cst_13 : f32 to vector<8x128xf32>
    %40 = arith.subf %39, %38 : vector<8x128xf32>
    %cst_14 = arith.constant 0.000000e+00 : f32
    %41 = vector.broadcast %cst_14 : f32 to vector<8x128xf32>
    %42 = arith.cmpf oge, %12, %41 : vector<8x128xf32>
    %cst_15 = arith.constant 0.000000e+00 : f32
    %43 = vector.broadcast %cst_15 : f32 to vector<8x128xf32>
    %44 = arith.subf %43, %40 : vector<8x128xf32>
    %45 = arith.select %42, %40, %44 : vector<8x128xi1>, vector<8x128xf32>
    %46 = arith.index_cast %c0_i32_1 : i32 to index
    %c0_16 = arith.constant 0 : index
    %c0_17 = arith.constant 0 : index
    %47 = vector.load %arg5[%46, %c0_16, %c0_17] : memref<8x8x128xf32, #tpu.memory_space<vmem>>, vector<1x8x128xf32>
    %48 = vector.shape_cast %47 : vector<1x8x128xf32> to vector<8x128xf32>
    %49 = arith.index_cast %c0_i32_1 : i32 to index
    %c0_18 = arith.constant 0 : index
    %c0_19 = arith.constant 0 : index
    %50 = vector.load %arg6[%49, %c0_18, %c0_19] : memref<8x8x128xf32, #tpu.memory_space<vmem>>, vector<1x8x128xf32>
    %51 = vector.shape_cast %50 : vector<1x8x128xf32> to vector<8x128xf32>
    %52 = arith.index_cast %c0_i32_1 : i32 to index
    %c0_20 = arith.constant 0 : index
    %c0_21 = arith.constant 0 : index
    %53 = vector.load %arg4[%52, %c0_20, %c0_21] : memref<8x8x128xf32, #tpu.memory_space<vmem>>, vector<1x8x128xf32>
    %54 = vector.shape_cast %53 : vector<1x8x128xf32> to vector<8x128xf32>
    %55 = arith.subf %8, %54 : vector<8x128xf32>
    %56 = arith.mulf %51, %55 : vector<8x128xf32>
    %57 = arith.addf %48, %56 : vector<8x128xf32>
    %58 = arith.subf %45, %57 : vector<8x128xf32>
    %59 = math.absf %58 : vector<8x128xf32>
    %60 = arith.maximumf %5, %59 : vector<8x128xf32>
    %c1_i32 = arith.constant 1 : i32
    %61 = arith.index_cast %c1_i32 : i32 to index
    %c0_22 = arith.constant 0 : index
    %c0_23 = arith.constant 0 : index
    %62 = vector.load %arg3[%61, %c0_22, %c0_23] : memref<8x8x128xf32, #tpu.memory_space<vmem>>, vector<1x8x128xf32>
    %63 = vector.shape_cast %62 : vector<1x8x128xf32> to vector<8x128xf32>
    %64 = vector.broadcast %3 : f32 to vector<8x128xf32>
    %65 = arith.subf %63, %64 : vector<8x128xf32>
    %66 = vector.broadcast %4 : f32 to vector<8x128xf32>
    %67 = arith.mulf %65, %66 : vector<8x128xf32>
    %68 = math.absf %67 : vector<8x128xf32>
    %cst_24 = arith.constant 0.327591091 : f32
    %69 = vector.broadcast %cst_24 : f32 to vector<8x128xf32>
    %70 = arith.mulf %69, %68 : vector<8x128xf32>
    %cst_25 = arith.constant 1.000000e+00 : f32
    %71 = vector.broadcast %cst_25 : f32 to vector<8x128xf32>
    %72 = arith.addf %71, %70 : vector<8x128xf32>
    %cst_26 = arith.constant 1.000000e+00 : f32
    %73 = vector.broadcast %cst_26 : f32 to vector<8x128xf32>
    %74 = arith.divf %73, %72 : vector<8x128xf32>
    %cst_27 = arith.constant 1.06140542 : f32
    %75 = vector.broadcast %cst_27 : f32 to vector<8x128xf32>
    %76 = arith.mulf %75, %74 : vector<8x128xf32>
    %cst_28 = arith.constant -1.45315206 : f32
    %77 = vector.broadcast %cst_28 : f32 to vector<8x128xf32>
    %78 = arith.addf %76, %77 : vector<8x128xf32>
    %79 = arith.mulf %78, %74 : vector<8x128xf32>
    %cst_29 = arith.constant 1.42141378 : f32
    %80 = vector.broadcast %cst_29 : f32 to vector<8x128xf32>
    %81 = arith.addf %79, %80 : vector<8x128xf32>
    %82 = arith.mulf %81, %74 : vector<8x128xf32>
    %cst_30 = arith.constant -0.284496725 : f32
    %83 = vector.broadcast %cst_30 : f32 to vector<8x128xf32>
    %84 = arith.addf %82, %83 : vector<8x128xf32>
    %85 = arith.mulf %84, %74 : vector<8x128xf32>
    %cst_31 = arith.constant 0.254829586 : f32
    %86 = vector.broadcast %cst_31 : f32 to vector<8x128xf32>
    %87 = arith.addf %85, %86 : vector<8x128xf32>
    %88 = arith.mulf %87, %74 : vector<8x128xf32>
    %cst_32 = arith.constant 0.000000e+00 : f32
    %89 = vector.broadcast %cst_32 : f32 to vector<8x128xf32>
    %90 = arith.subf %89, %68 : vector<8x128xf32>
    %91 = arith.mulf %90, %68 : vector<8x128xf32>
    %92 = math.exp %91 : vector<8x128xf32>
    %93 = arith.mulf %88, %92 : vector<8x128xf32>
    %cst_33 = arith.constant 1.000000e+00 : f32
    %94 = vector.broadcast %cst_33 : f32 to vector<8x128xf32>
    %95 = arith.subf %94, %93 : vector<8x128xf32>
    %cst_34 = arith.constant 0.000000e+00 : f32
    %96 = vector.broadcast %cst_34 : f32 to vector<8x128xf32>
    %97 = arith.cmpf oge, %67, %96 : vector<8x128xf32>
    %cst_35 = arith.constant 0.000000e+00 : f32
    %98 = vector.broadcast %cst_35 : f32 to vector<8x128xf32>
    %99 = arith.subf %98, %95 : vector<8x128xf32>
    %100 = arith.select %97, %95, %99 : vector<8x128xi1>, vector<8x128xf32>
    %101 = arith.index_cast %c1_i32 : i32 to index
    %c0_36 = arith.constant 0 : index
    %c0_37 = arith.constant 0 : index
    %102 = vector.load %arg5[%101, %c0_36, %c0_37] : memref<8x8x128xf32, #tpu.memory_space<vmem>>, vector<1x8x128xf32>
    %103 = vector.shape_cast %102 : vector<1x8x128xf32> to vector<8x128xf32>
    %104 = arith.index_cast %c1_i32 : i32 to index
    %c0_38 = arith.constant 0 : index
    %c0_39 = arith.constant 0 : index
    %105 = vector.load %arg6[%104, %c0_38, %c0_39] : memref<8x8x128xf32, #tpu.memory_space<vmem>>, vector<1x8x128xf32>
    %106 = vector.shape_cast %105 : vector<1x8x128xf32> to vector<8x128xf32>
    %107 = arith.index_cast %c1_i32 : i32 to index
    %c0_40 = arith.constant 0 : index
    %c0_41 = arith.constant 0 : index
    %108 = vector.load %arg4[%107, %c0_40, %c0_41] : memref<8x8x128xf32, #tpu.memory_space<vmem>>, vector<1x8x128xf32>
    %109 = vector.shape_cast %108 : vector<1x8x128xf32> to vector<8x128xf32>
    %110 = arith.subf %63, %109 : vector<8x128xf32>
    %111 = arith.mulf %106, %110 : vector<8x128xf32>
    %112 = arith.addf %103, %111 : vector<8x128xf32>
    %113 = arith.subf %100, %112 : vector<8x128xf32>
    %114 = math.absf %113 : vector<8x128xf32>
    %115 = arith.maximumf %60, %114 : vector<8x128xf32>
    %c2_i32 = arith.constant 2 : i32
    %116 = arith.index_cast %c2_i32 : i32 to index
    %c0_42 = arith.constant 0 : index
    %c0_43 = arith.constant 0 : index
    %117 = vector.load %arg3[%116, %c0_42, %c0_43] : memref<8x8x128xf32, #tpu.memory_space<vmem>>, vector<1x8x128xf32>
    %118 = vector.shape_cast %117 : vector<1x8x128xf32> to vector<8x128xf32>
    %119 = vector.broadcast %3 : f32 to vector<8x128xf32>
    %120 = arith.subf %118, %119 : vector<8x128xf32>
    %121 = vector.broadcast %4 : f32 to vector<8x128xf32>
    %122 = arith.mulf %120, %121 : vector<8x128xf32>
    %123 = math.absf %122 : vector<8x128xf32>
    %cst_44 = arith.constant 0.327591091 : f32
    %124 = vector.broadcast %cst_44 : f32 to vector<8x128xf32>
    %125 = arith.mulf %124, %123 : vector<8x128xf32>
    %cst_45 = arith.constant 1.000000e+00 : f32
    %126 = vector.broadcast %cst_45 : f32 to vector<8x128xf32>
    %127 = arith.addf %126, %125 : vector<8x128xf32>
    %cst_46 = arith.constant 1.000000e+00 : f32
    %128 = vector.broadcast %cst_46 : f32 to vector<8x128xf32>
    %129 = arith.divf %128, %127 : vector<8x128xf32>
    %cst_47 = arith.constant 1.06140542 : f32
    %130 = vector.broadcast %cst_47 : f32 to vector<8x128xf32>
    %131 = arith.mulf %130, %129 : vector<8x128xf32>
    %cst_48 = arith.constant -1.45315206 : f32
    %132 = vector.broadcast %cst_48 : f32 to vector<8x128xf32>
    %133 = arith.addf %131, %132 : vector<8x128xf32>
    %134 = arith.mulf %133, %129 : vector<8x128xf32>
    %cst_49 = arith.constant 1.42141378 : f32
    %135 = vector.broadcast %cst_49 : f32 to vector<8x128xf32>
    %136 = arith.addf %134, %135 : vector<8x128xf32>
    %137 = arith.mulf %136, %129 : vector<8x128xf32>
    %cst_50 = arith.constant -0.284496725 : f32
    %138 = vector.broadcast %cst_50 : f32 to vector<8x128xf32>
    %139 = arith.addf %137, %138 : vector<8x128xf32>
    %140 = arith.mulf %139, %129 : vector<8x128xf32>
    %cst_51 = arith.constant 0.254829586 : f32
    %141 = vector.broadcast %cst_51 : f32 to vector<8x128xf32>
    %142 = arith.addf %140, %141 : vector<8x128xf32>
    %143 = arith.mulf %142, %129 : vector<8x128xf32>
    %cst_52 = arith.constant 0.000000e+00 : f32
    %144 = vector.broadcast %cst_52 : f32 to vector<8x128xf32>
    %145 = arith.subf %144, %123 : vector<8x128xf32>
    %146 = arith.mulf %145, %123 : vector<8x128xf32>
    %147 = math.exp %146 : vector<8x128xf32>
    %148 = arith.mulf %143, %147 : vector<8x128xf32>
    %cst_53 = arith.constant 1.000000e+00 : f32
    %149 = vector.broadcast %cst_53 : f32 to vector<8x128xf32>
    %150 = arith.subf %149, %148 : vector<8x128xf32>
    %cst_54 = arith.constant 0.000000e+00 : f32
    %151 = vector.broadcast %cst_54 : f32 to vector<8x128xf32>
    %152 = arith.cmpf oge, %122, %151 : vector<8x128xf32>
    %cst_55 = arith.constant 0.000000e+00 : f32
    %153 = vector.broadcast %cst_55 : f32 to vector<8x128xf32>
    %154 = arith.subf %153, %150 : vector<8x128xf32>
    %155 = arith.select %152, %150, %154 : vector<8x128xi1>, vector<8x128xf32>
    %156 = arith.index_cast %c2_i32 : i32 to index
    %c0_56 = arith.constant 0 : index
    %c0_57 = arith.constant 0 : index
    %157 = vector.load %arg5[%156, %c0_56, %c0_57] : memref<8x8x128xf32, #tpu.memory_space<vmem>>, vector<1x8x128xf32>
    %158 = vector.shape_cast %157 : vector<1x8x128xf32> to vector<8x128xf32>
    %159 = arith.index_cast %c2_i32 : i32 to index
    %c0_58 = arith.constant 0 : index
    %c0_59 = arith.constant 0 : index
    %160 = vector.load %arg6[%159, %c0_58, %c0_59] : memref<8x8x128xf32, #tpu.memory_space<vmem>>, vector<1x8x128xf32>
    %161 = vector.shape_cast %160 : vector<1x8x128xf32> to vector<8x128xf32>
    %162 = arith.index_cast %c2_i32 : i32 to index
    %c0_60 = arith.constant 0 : index
    %c0_61 = arith.constant 0 : index
    %163 = vector.load %arg4[%162, %c0_60, %c0_61] : memref<8x8x128xf32, #tpu.memory_space<vmem>>, vector<1x8x128xf32>
    %164 = vector.shape_cast %163 : vector<1x8x128xf32> to vector<8x128xf32>
    %165 = arith.subf %118, %164 : vector<8x128xf32>
    %166 = arith.mulf %161, %165 : vector<8x128xf32>
    %167 = arith.addf %158, %166 : vector<8x128xf32>
    %168 = arith.subf %155, %167 : vector<8x128xf32>
    %169 = math.absf %168 : vector<8x128xf32>
    %170 = arith.maximumf %115, %169 : vector<8x128xf32>
    %c3_i32 = arith.constant 3 : i32
    %171 = arith.index_cast %c3_i32 : i32 to index
    %c0_62 = arith.constant 0 : index
    %c0_63 = arith.constant 0 : index
    %172 = vector.load %arg3[%171, %c0_62, %c0_63] : memref<8x8x128xf32, #tpu.memory_space<vmem>>, vector<1x8x128xf32>
    %173 = vector.shape_cast %172 : vector<1x8x128xf32> to vector<8x128xf32>
    %174 = vector.broadcast %3 : f32 to vector<8x128xf32>
    %175 = arith.subf %173, %174 : vector<8x128xf32>
    %176 = vector.broadcast %4 : f32 to vector<8x128xf32>
    %177 = arith.mulf %175, %176 : vector<8x128xf32>
    %178 = math.absf %177 : vector<8x128xf32>
    %cst_64 = arith.constant 0.327591091 : f32
    %179 = vector.broadcast %cst_64 : f32 to vector<8x128xf32>
    %180 = arith.mulf %179, %178 : vector<8x128xf32>
    %cst_65 = arith.constant 1.000000e+00 : f32
    %181 = vector.broadcast %cst_65 : f32 to vector<8x128xf32>
    %182 = arith.addf %181, %180 : vector<8x128xf32>
    %cst_66 = arith.constant 1.000000e+00 : f32
    %183 = vector.broadcast %cst_66 : f32 to vector<8x128xf32>
    %184 = arith.divf %183, %182 : vector<8x128xf32>
    %cst_67 = arith.constant 1.06140542 : f32
    %185 = vector.broadcast %cst_67 : f32 to vector<8x128xf32>
    %186 = arith.mulf %185, %184 : vector<8x128xf32>
    %cst_68 = arith.constant -1.45315206 : f32
    %187 = vector.broadcast %cst_68 : f32 to vector<8x128xf32>
    %188 = arith.addf %186, %187 : vector<8x128xf32>
    %189 = arith.mulf %188, %184 : vector<8x128xf32>
    %cst_69 = arith.constant 1.42141378 : f32
    %190 = vector.broadcast %cst_69 : f32 to vector<8x128xf32>
    %191 = arith.addf %189, %190 : vector<8x128xf32>
    %192 = arith.mulf %191, %184 : vector<8x128xf32>
    %cst_70 = arith.constant -0.284496725 : f32
    %193 = vector.broadcast %cst_70 : f32 to vector<8x128xf32>
    %194 = arith.addf %192, %193 : vector<8x128xf32>
    %195 = arith.mulf %194, %184 : vector<8x128xf32>
    %cst_71 = arith.constant 0.254829586 : f32
    %196 = vector.broadcast %cst_71 : f32 to vector<8x128xf32>
    %197 = arith.addf %195, %196 : vector<8x128xf32>
    %198 = arith.mulf %197, %184 : vector<8x128xf32>
    %cst_72 = arith.constant 0.000000e+00 : f32
    %199 = vector.broadcast %cst_72 : f32 to vector<8x128xf32>
    %200 = arith.subf %199, %178 : vector<8x128xf32>
    %201 = arith.mulf %200, %178 : vector<8x128xf32>
    %202 = math.exp %201 : vector<8x128xf32>
    %203 = arith.mulf %198, %202 : vector<8x128xf32>
    %cst_73 = arith.constant 1.000000e+00 : f32
    %204 = vector.broadcast %cst_73 : f32 to vector<8x128xf32>
    %205 = arith.subf %204, %203 : vector<8x128xf32>
    %cst_74 = arith.constant 0.000000e+00 : f32
    %206 = vector.broadcast %cst_74 : f32 to vector<8x128xf32>
    %207 = arith.cmpf oge, %177, %206 : vector<8x128xf32>
    %cst_75 = arith.constant 0.000000e+00 : f32
    %208 = vector.broadcast %cst_75 : f32 to vector<8x128xf32>
    %209 = arith.subf %208, %205 : vector<8x128xf32>
    %210 = arith.select %207, %205, %209 : vector<8x128xi1>, vector<8x128xf32>
    %211 = arith.index_cast %c3_i32 : i32 to index
    %c0_76 = arith.constant 0 : index
    %c0_77 = arith.constant 0 : index
    %212 = vector.load %arg5[%211, %c0_76, %c0_77] : memref<8x8x128xf32, #tpu.memory_space<vmem>>, vector<1x8x128xf32>
    %213 = vector.shape_cast %212 : vector<1x8x128xf32> to vector<8x128xf32>
    %214 = arith.index_cast %c3_i32 : i32 to index
    %c0_78 = arith.constant 0 : index
    %c0_79 = arith.constant 0 : index
    %215 = vector.load %arg6[%214, %c0_78, %c0_79] : memref<8x8x128xf32, #tpu.memory_space<vmem>>, vector<1x8x128xf32>
    %216 = vector.shape_cast %215 : vector<1x8x128xf32> to vector<8x128xf32>
    %217 = arith.index_cast %c3_i32 : i32 to index
    %c0_80 = arith.constant 0 : index
    %c0_81 = arith.constant 0 : index
    %218 = vector.load %arg4[%217, %c0_80, %c0_81] : memref<8x8x128xf32, #tpu.memory_space<vmem>>, vector<1x8x128xf32>
    %219 = vector.shape_cast %218 : vector<1x8x128xf32> to vector<8x128xf32>
    %220 = arith.subf %173, %219 : vector<8x128xf32>
    %221 = arith.mulf %216, %220 : vector<8x128xf32>
    %222 = arith.addf %213, %221 : vector<8x128xf32>
    %223 = arith.subf %210, %222 : vector<8x128xf32>
    %224 = math.absf %223 : vector<8x128xf32>
    %225 = arith.maximumf %170, %224 : vector<8x128xf32>
    %c4_i32 = arith.constant 4 : i32
    %226 = arith.index_cast %c4_i32 : i32 to index
    %c0_82 = arith.constant 0 : index
    %c0_83 = arith.constant 0 : index
    %227 = vector.load %arg3[%226, %c0_82, %c0_83] : memref<8x8x128xf32, #tpu.memory_space<vmem>>, vector<1x8x128xf32>
    %228 = vector.shape_cast %227 : vector<1x8x128xf32> to vector<8x128xf32>
    %229 = vector.broadcast %3 : f32 to vector<8x128xf32>
    %230 = arith.subf %228, %229 : vector<8x128xf32>
    %231 = vector.broadcast %4 : f32 to vector<8x128xf32>
    %232 = arith.mulf %230, %231 : vector<8x128xf32>
    %233 = math.absf %232 : vector<8x128xf32>
    %cst_84 = arith.constant 0.327591091 : f32
    %234 = vector.broadcast %cst_84 : f32 to vector<8x128xf32>
    %235 = arith.mulf %234, %233 : vector<8x128xf32>
    %cst_85 = arith.constant 1.000000e+00 : f32
    %236 = vector.broadcast %cst_85 : f32 to vector<8x128xf32>
    %237 = arith.addf %236, %235 : vector<8x128xf32>
    %cst_86 = arith.constant 1.000000e+00 : f32
    %238 = vector.broadcast %cst_86 : f32 to vector<8x128xf32>
    %239 = arith.divf %238, %237 : vector<8x128xf32>
    %cst_87 = arith.constant 1.06140542 : f32
    %240 = vector.broadcast %cst_87 : f32 to vector<8x128xf32>
    %241 = arith.mulf %240, %239 : vector<8x128xf32>
    %cst_88 = arith.constant -1.45315206 : f32
    %242 = vector.broadcast %cst_88 : f32 to vector<8x128xf32>
    %243 = arith.addf %241, %242 : vector<8x128xf32>
    %244 = arith.mulf %243, %239 : vector<8x128xf32>
    %cst_89 = arith.constant 1.42141378 : f32
    %245 = vector.broadcast %cst_89 : f32 to vector<8x128xf32>
    %246 = arith.addf %244, %245 : vector<8x128xf32>
    %247 = arith.mulf %246, %239 : vector<8x128xf32>
    %cst_90 = arith.constant -0.284496725 : f32
    %248 = vector.broadcast %cst_90 : f32 to vector<8x128xf32>
    %249 = arith.addf %247, %248 : vector<8x128xf32>
    %250 = arith.mulf %249, %239 : vector<8x128xf32>
    %cst_91 = arith.constant 0.254829586 : f32
    %251 = vector.broadcast %cst_91 : f32 to vector<8x128xf32>
    %252 = arith.addf %250, %251 : vector<8x128xf32>
    %253 = arith.mulf %252, %239 : vector<8x128xf32>
    %cst_92 = arith.constant 0.000000e+00 : f32
    %254 = vector.broadcast %cst_92 : f32 to vector<8x128xf32>
    %255 = arith.subf %254, %233 : vector<8x128xf32>
    %256 = arith.mulf %255, %233 : vector<8x128xf32>
    %257 = math.exp %256 : vector<8x128xf32>
    %258 = arith.mulf %253, %257 : vector<8x128xf32>
    %cst_93 = arith.constant 1.000000e+00 : f32
    %259 = vector.broadcast %cst_93 : f32 to vector<8x128xf32>
    %260 = arith.subf %259, %258 : vector<8x128xf32>
    %cst_94 = arith.constant 0.000000e+00 : f32
    %261 = vector.broadcast %cst_94 : f32 to vector<8x128xf32>
    %262 = arith.cmpf oge, %232, %261 : vector<8x128xf32>
    %cst_95 = arith.constant 0.000000e+00 : f32
    %263 = vector.broadcast %cst_95 : f32 to vector<8x128xf32>
    %264 = arith.subf %263, %260 : vector<8x128xf32>
    %265 = arith.select %262, %260, %264 : vector<8x128xi1>, vector<8x128xf32>
    %266 = arith.index_cast %c4_i32 : i32 to index
    %c0_96 = arith.constant 0 : index
    %c0_97 = arith.constant 0 : index
    %267 = vector.load %arg5[%266, %c0_96, %c0_97] : memref<8x8x128xf32, #tpu.memory_space<vmem>>, vector<1x8x128xf32>
    %268 = vector.shape_cast %267 : vector<1x8x128xf32> to vector<8x128xf32>
    %269 = arith.index_cast %c4_i32 : i32 to index
    %c0_98 = arith.constant 0 : index
    %c0_99 = arith.constant 0 : index
    %270 = vector.load %arg6[%269, %c0_98, %c0_99] : memref<8x8x128xf32, #tpu.memory_space<vmem>>, vector<1x8x128xf32>
    %271 = vector.shape_cast %270 : vector<1x8x128xf32> to vector<8x128xf32>
    %272 = arith.index_cast %c4_i32 : i32 to index
    %c0_100 = arith.constant 0 : index
    %c0_101 = arith.constant 0 : index
    %273 = vector.load %arg4[%272, %c0_100, %c0_101] : memref<8x8x128xf32, #tpu.memory_space<vmem>>, vector<1x8x128xf32>
    %274 = vector.shape_cast %273 : vector<1x8x128xf32> to vector<8x128xf32>
    %275 = arith.subf %228, %274 : vector<8x128xf32>
    %276 = arith.mulf %271, %275 : vector<8x128xf32>
    %277 = arith.addf %268, %276 : vector<8x128xf32>
    %278 = arith.subf %265, %277 : vector<8x128xf32>
    %279 = math.absf %278 : vector<8x128xf32>
    %280 = arith.maximumf %225, %279 : vector<8x128xf32>
    %c5_i32 = arith.constant 5 : i32
    %281 = arith.index_cast %c5_i32 : i32 to index
    %c0_102 = arith.constant 0 : index
    %c0_103 = arith.constant 0 : index
    %282 = vector.load %arg3[%281, %c0_102, %c0_103] : memref<8x8x128xf32, #tpu.memory_space<vmem>>, vector<1x8x128xf32>
    %283 = vector.shape_cast %282 : vector<1x8x128xf32> to vector<8x128xf32>
    %284 = vector.broadcast %3 : f32 to vector<8x128xf32>
    %285 = arith.subf %283, %284 : vector<8x128xf32>
    %286 = vector.broadcast %4 : f32 to vector<8x128xf32>
    %287 = arith.mulf %285, %286 : vector<8x128xf32>
    %288 = math.absf %287 : vector<8x128xf32>
    %cst_104 = arith.constant 0.327591091 : f32
    %289 = vector.broadcast %cst_104 : f32 to vector<8x128xf32>
    %290 = arith.mulf %289, %288 : vector<8x128xf32>
    %cst_105 = arith.constant 1.000000e+00 : f32
    %291 = vector.broadcast %cst_105 : f32 to vector<8x128xf32>
    %292 = arith.addf %291, %290 : vector<8x128xf32>
    %cst_106 = arith.constant 1.000000e+00 : f32
    %293 = vector.broadcast %cst_106 : f32 to vector<8x128xf32>
    %294 = arith.divf %293, %292 : vector<8x128xf32>
    %cst_107 = arith.constant 1.06140542 : f32
    %295 = vector.broadcast %cst_107 : f32 to vector<8x128xf32>
    %296 = arith.mulf %295, %294 : vector<8x128xf32>
    %cst_108 = arith.constant -1.45315206 : f32
    %297 = vector.broadcast %cst_108 : f32 to vector<8x128xf32>
    %298 = arith.addf %296, %297 : vector<8x128xf32>
    %299 = arith.mulf %298, %294 : vector<8x128xf32>
    %cst_109 = arith.constant 1.42141378 : f32
    %300 = vector.broadcast %cst_109 : f32 to vector<8x128xf32>
    %301 = arith.addf %299, %300 : vector<8x128xf32>
    %302 = arith.mulf %301, %294 : vector<8x128xf32>
    %cst_110 = arith.constant -0.284496725 : f32
    %303 = vector.broadcast %cst_110 : f32 to vector<8x128xf32>
    %304 = arith.addf %302, %303 : vector<8x128xf32>
    %305 = arith.mulf %304, %294 : vector<8x128xf32>
    %cst_111 = arith.constant 0.254829586 : f32
    %306 = vector.broadcast %cst_111 : f32 to vector<8x128xf32>
    %307 = arith.addf %305, %306 : vector<8x128xf32>
    %308 = arith.mulf %307, %294 : vector<8x128xf32>
    %cst_112 = arith.constant 0.000000e+00 : f32
    %309 = vector.broadcast %cst_112 : f32 to vector<8x128xf32>
    %310 = arith.subf %309, %288 : vector<8x128xf32>
    %311 = arith.mulf %310, %288 : vector<8x128xf32>
    %312 = math.exp %311 : vector<8x128xf32>
    %313 = arith.mulf %308, %312 : vector<8x128xf32>
    %cst_113 = arith.constant 1.000000e+00 : f32
    %314 = vector.broadcast %cst_113 : f32 to vector<8x128xf32>
    %315 = arith.subf %314, %313 : vector<8x128xf32>
    %cst_114 = arith.constant 0.000000e+00 : f32
    %316 = vector.broadcast %cst_114 : f32 to vector<8x128xf32>
    %317 = arith.cmpf oge, %287, %316 : vector<8x128xf32>
    %cst_115 = arith.constant 0.000000e+00 : f32
    %318 = vector.broadcast %cst_115 : f32 to vector<8x128xf32>
    %319 = arith.subf %318, %315 : vector<8x128xf32>
    %320 = arith.select %317, %315, %319 : vector<8x128xi1>, vector<8x128xf32>
    %321 = arith.index_cast %c5_i32 : i32 to index
    %c0_116 = arith.constant 0 : index
    %c0_117 = arith.constant 0 : index
    %322 = vector.load %arg5[%321, %c0_116, %c0_117] : memref<8x8x128xf32, #tpu.memory_space<vmem>>, vector<1x8x128xf32>
    %323 = vector.shape_cast %322 : vector<1x8x128xf32> to vector<8x128xf32>
    %324 = arith.index_cast %c5_i32 : i32 to index
    %c0_118 = arith.constant 0 : index
    %c0_119 = arith.constant 0 : index
    %325 = vector.load %arg6[%324, %c0_118, %c0_119] : memref<8x8x128xf32, #tpu.memory_space<vmem>>, vector<1x8x128xf32>
    %326 = vector.shape_cast %325 : vector<1x8x128xf32> to vector<8x128xf32>
    %327 = arith.index_cast %c5_i32 : i32 to index
    %c0_120 = arith.constant 0 : index
    %c0_121 = arith.constant 0 : index
    %328 = vector.load %arg4[%327, %c0_120, %c0_121] : memref<8x8x128xf32, #tpu.memory_space<vmem>>, vector<1x8x128xf32>
    %329 = vector.shape_cast %328 : vector<1x8x128xf32> to vector<8x128xf32>
    %330 = arith.subf %283, %329 : vector<8x128xf32>
    %331 = arith.mulf %326, %330 : vector<8x128xf32>
    %332 = arith.addf %323, %331 : vector<8x128xf32>
    %333 = arith.subf %320, %332 : vector<8x128xf32>
    %334 = math.absf %333 : vector<8x128xf32>
    %335 = arith.maximumf %280, %334 : vector<8x128xf32>
    %c6_i32 = arith.constant 6 : i32
    %336 = arith.index_cast %c6_i32 : i32 to index
    %c0_122 = arith.constant 0 : index
    %c0_123 = arith.constant 0 : index
    %337 = vector.load %arg3[%336, %c0_122, %c0_123] : memref<8x8x128xf32, #tpu.memory_space<vmem>>, vector<1x8x128xf32>
    %338 = vector.shape_cast %337 : vector<1x8x128xf32> to vector<8x128xf32>
    %339 = vector.broadcast %3 : f32 to vector<8x128xf32>
    %340 = arith.subf %338, %339 : vector<8x128xf32>
    %341 = vector.broadcast %4 : f32 to vector<8x128xf32>
    %342 = arith.mulf %340, %341 : vector<8x128xf32>
    %343 = math.absf %342 : vector<8x128xf32>
    %cst_124 = arith.constant 0.327591091 : f32
    %344 = vector.broadcast %cst_124 : f32 to vector<8x128xf32>
    %345 = arith.mulf %344, %343 : vector<8x128xf32>
    %cst_125 = arith.constant 1.000000e+00 : f32
    %346 = vector.broadcast %cst_125 : f32 to vector<8x128xf32>
    %347 = arith.addf %346, %345 : vector<8x128xf32>
    %cst_126 = arith.constant 1.000000e+00 : f32
    %348 = vector.broadcast %cst_126 : f32 to vector<8x128xf32>
    %349 = arith.divf %348, %347 : vector<8x128xf32>
    %cst_127 = arith.constant 1.06140542 : f32
    %350 = vector.broadcast %cst_127 : f32 to vector<8x128xf32>
    %351 = arith.mulf %350, %349 : vector<8x128xf32>
    %cst_128 = arith.constant -1.45315206 : f32
    %352 = vector.broadcast %cst_128 : f32 to vector<8x128xf32>
    %353 = arith.addf %351, %352 : vector<8x128xf32>
    %354 = arith.mulf %353, %349 : vector<8x128xf32>
    %cst_129 = arith.constant 1.42141378 : f32
    %355 = vector.broadcast %cst_129 : f32 to vector<8x128xf32>
    %356 = arith.addf %354, %355 : vector<8x128xf32>
    %357 = arith.mulf %356, %349 : vector<8x128xf32>
    %cst_130 = arith.constant -0.284496725 : f32
    %358 = vector.broadcast %cst_130 : f32 to vector<8x128xf32>
    %359 = arith.addf %357, %358 : vector<8x128xf32>
    %360 = arith.mulf %359, %349 : vector<8x128xf32>
    %cst_131 = arith.constant 0.254829586 : f32
    %361 = vector.broadcast %cst_131 : f32 to vector<8x128xf32>
    %362 = arith.addf %360, %361 : vector<8x128xf32>
    %363 = arith.mulf %362, %349 : vector<8x128xf32>
    %cst_132 = arith.constant 0.000000e+00 : f32
    %364 = vector.broadcast %cst_132 : f32 to vector<8x128xf32>
    %365 = arith.subf %364, %343 : vector<8x128xf32>
    %366 = arith.mulf %365, %343 : vector<8x128xf32>
    %367 = math.exp %366 : vector<8x128xf32>
    %368 = arith.mulf %363, %367 : vector<8x128xf32>
    %cst_133 = arith.constant 1.000000e+00 : f32
    %369 = vector.broadcast %cst_133 : f32 to vector<8x128xf32>
    %370 = arith.subf %369, %368 : vector<8x128xf32>
    %cst_134 = arith.constant 0.000000e+00 : f32
    %371 = vector.broadcast %cst_134 : f32 to vector<8x128xf32>
    %372 = arith.cmpf oge, %342, %371 : vector<8x128xf32>
    %cst_135 = arith.constant 0.000000e+00 : f32
    %373 = vector.broadcast %cst_135 : f32 to vector<8x128xf32>
    %374 = arith.subf %373, %370 : vector<8x128xf32>
    %375 = arith.select %372, %370, %374 : vector<8x128xi1>, vector<8x128xf32>
    %376 = arith.index_cast %c6_i32 : i32 to index
    %c0_136 = arith.constant 0 : index
    %c0_137 = arith.constant 0 : index
    %377 = vector.load %arg5[%376, %c0_136, %c0_137] : memref<8x8x128xf32, #tpu.memory_space<vmem>>, vector<1x8x128xf32>
    %378 = vector.shape_cast %377 : vector<1x8x128xf32> to vector<8x128xf32>
    %379 = arith.index_cast %c6_i32 : i32 to index
    %c0_138 = arith.constant 0 : index
    %c0_139 = arith.constant 0 : index
    %380 = vector.load %arg6[%379, %c0_138, %c0_139] : memref<8x8x128xf32, #tpu.memory_space<vmem>>, vector<1x8x128xf32>
    %381 = vector.shape_cast %380 : vector<1x8x128xf32> to vector<8x128xf32>
    %382 = arith.index_cast %c6_i32 : i32 to index
    %c0_140 = arith.constant 0 : index
    %c0_141 = arith.constant 0 : index
    %383 = vector.load %arg4[%382, %c0_140, %c0_141] : memref<8x8x128xf32, #tpu.memory_space<vmem>>, vector<1x8x128xf32>
    %384 = vector.shape_cast %383 : vector<1x8x128xf32> to vector<8x128xf32>
    %385 = arith.subf %338, %384 : vector<8x128xf32>
    %386 = arith.mulf %381, %385 : vector<8x128xf32>
    %387 = arith.addf %378, %386 : vector<8x128xf32>
    %388 = arith.subf %375, %387 : vector<8x128xf32>
    %389 = math.absf %388 : vector<8x128xf32>
    %390 = arith.maximumf %335, %389 : vector<8x128xf32>
    %c7_i32 = arith.constant 7 : i32
    %391 = arith.index_cast %c7_i32 : i32 to index
    %c0_142 = arith.constant 0 : index
    %c0_143 = arith.constant 0 : index
    %392 = vector.load %arg3[%391, %c0_142, %c0_143] : memref<8x8x128xf32, #tpu.memory_space<vmem>>, vector<1x8x128xf32>
    %393 = vector.shape_cast %392 : vector<1x8x128xf32> to vector<8x128xf32>
    %394 = vector.broadcast %3 : f32 to vector<8x128xf32>
    %395 = arith.subf %393, %394 : vector<8x128xf32>
    %396 = vector.broadcast %4 : f32 to vector<8x128xf32>
    %397 = arith.mulf %395, %396 : vector<8x128xf32>
    %398 = math.absf %397 : vector<8x128xf32>
    %cst_144 = arith.constant 0.327591091 : f32
    %399 = vector.broadcast %cst_144 : f32 to vector<8x128xf32>
    %400 = arith.mulf %399, %398 : vector<8x128xf32>
    %cst_145 = arith.constant 1.000000e+00 : f32
    %401 = vector.broadcast %cst_145 : f32 to vector<8x128xf32>
    %402 = arith.addf %401, %400 : vector<8x128xf32>
    %cst_146 = arith.constant 1.000000e+00 : f32
    %403 = vector.broadcast %cst_146 : f32 to vector<8x128xf32>
    %404 = arith.divf %403, %402 : vector<8x128xf32>
    %cst_147 = arith.constant 1.06140542 : f32
    %405 = vector.broadcast %cst_147 : f32 to vector<8x128xf32>
    %406 = arith.mulf %405, %404 : vector<8x128xf32>
    %cst_148 = arith.constant -1.45315206 : f32
    %407 = vector.broadcast %cst_148 : f32 to vector<8x128xf32>
    %408 = arith.addf %406, %407 : vector<8x128xf32>
    %409 = arith.mulf %408, %404 : vector<8x128xf32>
    %cst_149 = arith.constant 1.42141378 : f32
    %410 = vector.broadcast %cst_149 : f32 to vector<8x128xf32>
    %411 = arith.addf %409, %410 : vector<8x128xf32>
    %412 = arith.mulf %411, %404 : vector<8x128xf32>
    %cst_150 = arith.constant -0.284496725 : f32
    %413 = vector.broadcast %cst_150 : f32 to vector<8x128xf32>
    %414 = arith.addf %412, %413 : vector<8x128xf32>
    %415 = arith.mulf %414, %404 : vector<8x128xf32>
    %cst_151 = arith.constant 0.254829586 : f32
    %416 = vector.broadcast %cst_151 : f32 to vector<8x128xf32>
    %417 = arith.addf %415, %416 : vector<8x128xf32>
    %418 = arith.mulf %417, %404 : vector<8x128xf32>
    %cst_152 = arith.constant 0.000000e+00 : f32
    %419 = vector.broadcast %cst_152 : f32 to vector<8x128xf32>
    %420 = arith.subf %419, %398 : vector<8x128xf32>
    %421 = arith.mulf %420, %398 : vector<8x128xf32>
    %422 = math.exp %421 : vector<8x128xf32>
    %423 = arith.mulf %418, %422 : vector<8x128xf32>
    %cst_153 = arith.constant 1.000000e+00 : f32
    %424 = vector.broadcast %cst_153 : f32 to vector<8x128xf32>
    %425 = arith.subf %424, %423 : vector<8x128xf32>
    %cst_154 = arith.constant 0.000000e+00 : f32
    %426 = vector.broadcast %cst_154 : f32 to vector<8x128xf32>
    %427 = arith.cmpf oge, %397, %426 : vector<8x128xf32>
    %cst_155 = arith.constant 0.000000e+00 : f32
    %428 = vector.broadcast %cst_155 : f32 to vector<8x128xf32>
    %429 = arith.subf %428, %425 : vector<8x128xf32>
    %430 = arith.select %427, %425, %429 : vector<8x128xi1>, vector<8x128xf32>
    %431 = arith.index_cast %c7_i32 : i32 to index
    %c0_156 = arith.constant 0 : index
    %c0_157 = arith.constant 0 : index
    %432 = vector.load %arg5[%431, %c0_156, %c0_157] : memref<8x8x128xf32, #tpu.memory_space<vmem>>, vector<1x8x128xf32>
    %433 = vector.shape_cast %432 : vector<1x8x128xf32> to vector<8x128xf32>
    %434 = arith.index_cast %c7_i32 : i32 to index
    %c0_158 = arith.constant 0 : index
    %c0_159 = arith.constant 0 : index
    %435 = vector.load %arg6[%434, %c0_158, %c0_159] : memref<8x8x128xf32, #tpu.memory_space<vmem>>, vector<1x8x128xf32>
    %436 = vector.shape_cast %435 : vector<1x8x128xf32> to vector<8x128xf32>
    %437 = arith.index_cast %c7_i32 : i32 to index
    %c0_160 = arith.constant 0 : index
    %c0_161 = arith.constant 0 : index
    %438 = vector.load %arg4[%437, %c0_160, %c0_161] : memref<8x8x128xf32, #tpu.memory_space<vmem>>, vector<1x8x128xf32>
    %439 = vector.shape_cast %438 : vector<1x8x128xf32> to vector<8x128xf32>
    %440 = arith.subf %393, %439 : vector<8x128xf32>
    %441 = arith.mulf %436, %440 : vector<8x128xf32>
    %442 = arith.addf %433, %441 : vector<8x128xf32>
    %443 = arith.subf %430, %442 : vector<8x128xf32>
    %444 = math.absf %443 : vector<8x128xf32>
    %445 = arith.maximumf %390, %444 : vector<8x128xf32>
    %c8_i32 = arith.constant 8 : i32
    %c0_162 = arith.constant 0 : index
    %c0_163 = arith.constant 0 : index
    %c0_164 = arith.constant 0 : index
    %446 = vector.load %arg7[%c0_162, %c0_163, %c0_164] : memref<1x8x128xf32, #tpu.memory_space<vmem>>, vector<1x8x128xf32>
    %447 = vector.shape_cast %446 : vector<1x8x128xf32> to vector<8x128xf32>
    %448 = arith.maximumf %447, %445 : vector<8x128xf32>
    %c0_165 = arith.constant 0 : index
    %c0_166 = arith.constant 0 : index
    %c0_167 = arith.constant 0 : index
    %449 = vector.load %arg7[%c0_165, %c0_166, %c0_167] : memref<1x8x128xf32, #tpu.memory_space<vmem>>, vector<1x8x128xf32>
    %450 = vector.shape_cast %449 : vector<1x8x128xf32> to vector<8x128xf32>
    %451 = vector.shape_cast %448 : vector<8x128xf32> to vector<1x8x128xf32>
    tpu.vector_store %arg7[%c0_165, %c0_166, %c0_167], %451 {strides = array<i32>} : memref<1x8x128xf32, #tpu.memory_space<vmem>>, vector<1x8x128xf32>,
    return
  }
  func.func @transform_0(%arg0: i32, %arg1: i32, %arg2: memref<2xf32, #tpu.memory_space<smem>>) -> (i32, i32, i32) {
    %c1_i32 = arith.constant 1 : i32
    %0 = arith.muli %arg0, %c1_i32 : i32
    %1 = arith.addi %0, %arg1 : i32
    %c0_i32 = arith.constant 0 : i32
    %c0_i32_0 = arith.constant 0 : i32
    %c0_i32_1 = arith.constant 0 : i32
    return %1, %c0_i32, %c0_i32_0 : i32, i32, i32
  }
  func.func @transform_1(%arg0: i32, %arg1: i32, %arg2: memref<2xf32, #tpu.memory_space<smem>>) -> (i32, i32, i32) {
    %c1_i32 = arith.constant 1 : i32
    %0 = arith.muli %arg0, %c1_i32 : i32
    %1 = arith.addi %0, %arg1 : i32
    %c0_i32 = arith.constant 0 : i32
    %c0_i32_0 = arith.constant 0 : i32
    %c0_i32_1 = arith.constant 0 : i32
    return %1, %c0_i32, %c0_i32_0 : i32, i32, i32
  }
  func.func @transform_2(%arg0: i32, %arg1: i32, %arg2: memref<2xf32, #tpu.memory_space<smem>>) -> (i32, i32, i32) {
    %c1_i32 = arith.constant 1 : i32
    %0 = arith.muli %arg0, %c1_i32 : i32
    %1 = arith.addi %0, %arg1 : i32
    %c0_i32 = arith.constant 0 : i32
    %c0_i32_0 = arith.constant 0 : i32
    %c0_i32_1 = arith.constant 0 : i32
    return %1, %c0_i32, %c0_i32_0 : i32, i32, i32
  }
  func.func @transform_3(%arg0: i32, %arg1: i32, %arg2: memref<2xf32, #tpu.memory_space<smem>>) -> (i32, i32, i32) {
    %c1_i32 = arith.constant 1 : i32
    %0 = arith.muli %arg0, %c1_i32 : i32
    %1 = arith.addi %0, %arg1 : i32
    %c0_i32 = arith.constant 0 : i32
    %c0_i32_0 = arith.constant 0 : i32
    %c0_i32_1 = arith.constant 0 : i32
    return %1, %c0_i32, %c0_i32_0 : i32, i32, i32
  }
  func.func @transform_4(%arg0: i32, %arg1: i32, %arg2: memref<2xf32, #tpu.memory_space<smem>>) -> (i32, i32, i32) {
    %c0_i32 = arith.constant 0 : i32
    %c0_i32_0 = arith.constant 0 : i32
    %c0_i32_1 = arith.constant 0 : i32
    return %arg0, %c0_i32, %c0_i32_0 : i32, i32, i32
  }
}

</mosaic_0001>

<bundles_post_ra>
// kernel: custom-call.1
= control target key start
LH: loop header
LB: loop body
LE: loop exit
PB: predicated region body
PF: predicated region fallthrough
CT: control target
= control target key end

     0   :  { %s6_s0 = inlined_call_operand.vmem [shape: u32[2048], index: 0, kind: output, shape index: {}]  }

// kernel: ne.4
= control target key start
LH: loop header
LB: loop body
LE: loop exit
PB: predicated region body
PF: predicated region fallthrough
CT: control target
= control target key end

     0   :  { %v34_v4 = vmov 0   ;;  %s68_s0 = inlined_call_operand.vmem [shape: f32[2048], index: 0, kind: input, shape index: {}, may-alias: {0,1}]   ;;  %s69_s1 = inlined_call_operand.vmem [shape: f32[2048], index: 1, kind: input, shape index: {}, may-alias: {0,1}]   ;;  %s70_s2 = inlined_call_operand.vmem [shape: pred[2048], index: 2, kind: output, shape index: {}]  }
   0x1   :  { %v3_v0 = vld [vmem:[%s68_s0] sm:$0xff]  ;;  %v30_v2 = vld [vmem:[%s68_s0 + $0x8] sm:$0xff] }
   0x2   :  { %v4_v1 = vld [vmem:[%s69_s1] sm:$0xff]  ;;  %v31_v3 = vld [vmem:[%s69_s1 + $0x8] sm:$0xff] }
   0x3   :  { %vm7_vm0 = vcmp.ne.f32.partialorder %v3_v0, %v4_v1  ;;  %vm21_vm1 = vcmp.ne.f32.partialorder %v30_v2, %v31_v3 }
   0x4   :  { %v8_v5 = vsel %vm7_vm0, 1, %v34_v4  ;;  %v22_v7 = vsel %vm21_vm1, 1, %v34_v4 }
   0x5   :  { %v10_v6 = vpack.c.b16 0, %v8_v5  ;;  %v25_v8 = vpack.c.b16 0, %v22_v7 }
   0x7   :  { %v11_v9 = vpack.c.b8 0, %v10_v6  ;;  %v26_v10 = vpack.c.b8 0, %v25_v8 }
   0x9   :  { %14 = vst [vmem:[%s70_s2] sm:$0x3] %v11_v9 }
   0xa   :  { %32 = vst [vmem:[%s70_s2 + $0x2] sm:$0x3] %v26_v10 }

// kernel: smooth_l1_ks_loss.3
= control target key start
LH: loop header
LB: loop body
LE: loop exit
PB: predicated region body
PF: predicated region fallthrough
CT: control target
= control target key end

     0   :  { %s195_s0 = inlined_call_operand.<no memory space> [shape: f32[1], index: 0, kind: input, shape index: {}]   ;;  %s196_s1 = inlined_call_operand.vmem [shape: f32[8,8,128], index: 1, kind: input, shape index: {}]   ;;  %s197_s2 = inlined_call_operand.vmem [shape: f32[1,8,128], index: 2, kind: output, shape index: {0}]   ;;  %s198_s4 = inlined_call_operand.vmem [shape: f32[1,8,128], index: 4, kind: output, shape index: {2}]   ;;  %s199_s3 = inlined_call_operand.vmem [shape: f32[1,8,128], index: 3, kind: output, shape index: {1}]  }
   0x1   :  { %v43_v0 = vld [vmem:[%s196_s1] sm:$0xff]  ;;  %v44_v1 = vstv %s195_s0  ;;  %v125_v2 = vld [vmem:[%s196_s1 + $0x8] sm:$0xff]  ;;  %v126_v3 = vld [vmem:[%s196_s1 + $0x10] sm:$0xff] }
   0x2   :  { %v45_v4 = vsub.f32 %v43_v0, %v44_v1  ;;  %v51_v5 = vsub.f32 %v125_v2, %v44_v1  ;;  %v58_v6 = vsub.f32 %v126_v3, %v44_v1  ;;  %v127_v7 = vld [vmem:[%s196_s1 + $0x18] sm:$0xff]  ;;  %v128_v8 = vld [vmem:[%s196_s1 + $0x20] sm:$0xff]  ;;  %v55_v10 = vmax.f32 %v43_v0, %v125_v2  ;;  %v129_v12 = vld [vmem:[%s196_s1 + $0x28] sm:$0xff] }
   0x3   :  { %v65_v9 = vsub.f32 %v127_v7, %v44_v1  ;;  %v72_v14 = vsub.f32 %v128_v8, %v44_v1  ;;  %v130_v18 = vld [vmem:[%s196_s1 + $0x30] sm:$0xff]  ;;  %v79_v19 = vsub.f32 %v129_v12, %v44_v1  ;;  %v131_v24 = vld [vmem:[%s196_s1 + $0x38] sm:$0xff] }
   0x4   :  { %v52_v11 = vadd.f32 %v51_v5, %v45_v4  ;;  %v47_v13 = vmul.f32 %v45_v4, %v45_v4  ;;  %v53_v15 = vmul.f32 %v51_v5, %v51_v5  ;;  %v60_v16 = vmul.f32 %v58_v6, %v58_v6 }
   0x5   :  { %v67_v21 = vmul.f32 %v65_v9, %v65_v9  ;;  %v62_v22 = vmax.f32 %v55_v10, %v126_v3  ;;  %v86_v25 = vsub.f32 %v130_v18, %v44_v1  ;;  %v74_v27 = vmul.f32 %v72_v14, %v72_v14 }
   0x6   :  { %v59_v17 = vadd.f32 %v58_v6, %v52_v11  ;;  %v54_v20 = vadd.f32 %v53_v15, %v47_v13  ;;  %v93_v30 = vsub.f32 %v131_v24, %v44_v1  ;;  %v81_v32 = vmul.f32 %v79_v19, %v79_v19 }
   0x7   :  { %v69_v28 = vmax.f32 %v62_v22, %v127_v7  ;;  %v88_v36 = vmul.f32 %v86_v25, %v86_v25 }
   0x8   :  { %v66_v23 = vadd.f32 %v65_v9, %v59_v17  ;;  %v61_v26 = vadd.f32 %v60_v16, %v54_v20  ;;  %v95_v40 = vmul.f32 %v93_v30, %v93_v30 }
   0x9   :  { %v76_v33 = vmax.f32 %v69_v28, %v128_v8 }
   0xa   :  { %v73_v29 = vadd.f32 %v72_v14, %v66_v23  ;;  %v68_v31 = vadd.f32 %v67_v21, %v61_v26 }
   0xb   :  { %v83_v37 = vmax.f32 %v76_v33, %v129_v12 }
   0xc   :  { %v80_v34 = vadd.f32 %v79_v19, %v73_v29  ;;  %v75_v35 = vadd.f32 %v74_v27, %v68_v31 }
   0xd   :  { %v90_v41 = vmax.f32 %v83_v37, %v130_v18 }
   0xe   :  { %v87_v38 = vadd.f32 %v86_v25, %v80_v34  ;;  %v82_v39 = vadd.f32 %v81_v32, %v75_v35 }
   0xf   :  { %v97_v44 = vmax.f32 %v90_v41, %v131_v24 }
  0x10   :  { %v94_v42 = vadd.f32 %v93_v30, %v87_v38  ;;  %v89_v43 = vadd.f32 %v88_v36, %v82_v39 }
  0x11   :  { %106 = vst [vmem:[%s198_s4] sm:$0xff] %v97_v44 }
  0x12   :  { %v96_v45 = vadd.f32 %v95_v40, %v89_v43  ;;  %100 = vst [vmem:[%s197_s2] sm:$0xff] %v94_v42 }
  0x14   :  { %103 = vst [vmem:[%s199_s3] sm:$0xff] %v96_v45 }

// kernel: smooth_l1_ks_loss.4
= control target key start
LH: loop header
LB: loop body
LE: loop exit
PB: predicated region body
PF: predicated region fallthrough
CT: control target
= control target key end

     0   :  { %s274_s21 = smov [#allocation3]   ;;  %s428_s0 = inlined_call_operand.vmem [shape: f32[4], index: 0, kind: input, shape index: {}]   ;;  %s429_s1 = inlined_call_operand.vmem [shape: f32[8,8,128], index: 1, kind: input, shape index: {}]   ;;  %s430_s2 = inlined_call_operand.vmem [shape: f32[8,8,128], index: 2, kind: input, shape index: {}]   ;;  %s431_s3 = inlined_call_operand.vmem [shape: f32[1,8,128], index: 3, kind: output, shape index: {0}]   ;;  %s432_s4 = inlined_call_operand.vmem [shape: f32[1,8,128], index: 4, kind: output, shape index: {1}]   ;;  %s433_s5 = inlined_call_operand.vmem [shape: f32[1,8,128], index: 5, kind: output, shape index: {2}]  }
   0x1   :  { %s12_s20 = sshll.u32 %s428_s0, 4  ;;  %s13_s20 = int_to_ptr.vmem [resolvable:$true] %s12_s20 }
   0x2   :  { %15 = dma.vmem_to_smem %s13_s20, 16, %s274_s21, [#allocation2] }
   0x3   :  { %272 = dma.done.wait [#allocation2], 16 }
   0x4   :  { %273 = vsyncadd [#allocation2], 4294967280 }
   0x5   :  { %18 = sfence }
   0x6   :  { %s308_s22 = sld [smem:[#allocation3 + $0x3]]  ;;  %v78_v0 = vld [vmem:[%s429_s1] sm:$0xff]  ;;  %v244_v2 = vld [vmem:[%s429_s1 + $0x8] sm:$0xff]  ;;  %v246_v5 = vld [vmem:[%s429_s1 + $0x10] sm:$0xff] }
   0x7   :  { %v79_v1 = vld [vmem:[%s430_s2] sm:$0xff]  ;;  %v245_v4 = vld [vmem:[%s430_s2 + $0x8] sm:$0xff]  ;;  %v247_v6 = vld [vmem:[%s430_s2 + $0x10] sm:$0xff]  ;;  %s339_s15 = sld [smem:[#allocation3]] }
   0x8   :  { %v80_v3 = vsub.f32 %v78_v0, %v79_v1  ;;  %v100_v7 = vsub.f32 %v244_v2, %v245_v4  ;;  %v328_v8 = vsub.f32 %v246_v5, %v247_v6  ;;  %v248_v9 = vld [vmem:[%s429_s1 + $0x18] sm:$0xff]  ;;  %v250_v11 = vld [vmem:[%s429_s1 + $0x20] sm:$0xff]  ;;  %v252_v15 = vld [vmem:[%s429_s1 + $0x28] sm:$0xff]  ;;  %s352_s23 = sld [smem:[#allocation3 + $0x1]] }
   0x9   :  { %v249_v10 = vld [vmem:[%s430_s2 + $0x18] sm:$0xff]  ;;  %v251_v14 = vld [vmem:[%s430_s2 + $0x20] sm:$0xff]  ;;  %v253_v16 = vld [vmem:[%s430_s2 + $0x28] sm:$0xff]  ;;  %s369_s29 = sld [smem:[#allocation3 + $0x2]] }
   0xa   :  { %v84_v12 = vmul.f32 %v80_v3, %v80_v3  ;;  %v341_v13 = vsub.f32 %v248_v9, %v249_v10  ;;  %v103_v17 = vmul.f32 %v100_v7, %v100_v7  ;;  %v119_v18 = vmul.f32 %v328_v8, %v328_v8  ;;  %v254_v21 = vld [vmem:[%s429_s1 + $0x30] sm:$0xff]  ;;  %v256_v23 = vld [vmem:[%s429_s1 + $0x38] sm:$0xff] }
   0xb   :  { %v356_v19 = vsub.f32 %v250_v11, %v251_v14  ;;  %v358_v20 = vsub.f32 %v252_v15, %v253_v16  ;;  %v255_v22 = vld [vmem:[%s430_s2 + $0x30] sm:$0xff]  ;;  %v257_v26 = vld [vmem:[%s430_s2 + $0x38] sm:$0xff]  ;;  %v81_v27 = vand.u32 2147483647, %v80_v3  ;;  %v101_v28 = vand.u32 2147483647, %v100_v7 }
   0xc   :  { %v135_v24 = vmul.f32 %v341_v13, %v341_v13  ;;  %v373_v25 = vsub.f32 %v254_v21, %v255_v22  ;;  %v90_v29 = vstv %s308_s22  ;;  %v383_v32 = vsub.f32 %v256_v23, %v257_v26 }
   0xd   :  { %v151_v30 = vmul.f32 %v356_v19, %v356_v19  ;;  %v167_v31 = vmul.f32 %v358_v20, %v358_v20  ;;  %v91_v33 = vsub.f32 %v78_v0, %v90_v29  ;;  %v107_v34 = vsub.f32 %v244_v2, %v90_v29 }
   0xe   :  { %v123_v35 = vsub.f32 %v246_v5, %v90_v29  ;;  %v139_v36 = vsub.f32 %v248_v9, %v90_v29  ;;  %v155_v37 = vsub.f32 %v250_v11, %v90_v29  ;;  %v171_v38 = vsub.f32 %v252_v15, %v90_v29 }
   0xf   :  { %v183_v39 = vmul.f32 %v373_v25, %v373_v25  ;;  %v187_v40 = vsub.f32 %v254_v21, %v90_v29  ;;  %v108_v41 = vadd.f32 %v107_v34, %v91_v33  ;;  %v389_v42 = vmul.f32 %v383_v32, %v383_v32 }
  0x10   :  { %v203_v43 = vsub.f32 %v256_v23, %v90_v29  ;;  %v93_v44 = vmul.f32 %v91_v33, %v91_v33  ;;  %v109_v45 = vmul.f32 %v107_v34, %v107_v34  ;;  %v125_v46 = vmul.f32 %v123_v35, %v123_v35 }
  0x11   :  { %v141_v47 = vmul.f32 %v139_v36, %v139_v36  ;;  %v157_v48 = vmul.f32 %v155_v37, %v155_v37  ;;  %v124_v49 = vadd.f32 %v123_v35, %v108_v41  ;;  %v173_v50 = vmul.f32 %v171_v38, %v171_v38 }
  0x12   :  { %v189_v51 = vmul.f32 %v187_v40, %v187_v40  ;;  %v205_v52 = vmul.f32 %v203_v43, %v203_v43  ;;  %v110_v53 = vadd.f32 %v109_v45, %v93_v44  ;;  %v82_v54 = vstv %s339_s15 }
  0x13   :  { %v85_v55 = vstv %s369_s29  ;;  %v87_v56 = vstv %s352_s23  ;;  %v140_v57 = vadd.f32 %v139_v36, %v124_v49  ;;  %vm394_vm0 = vcmp.lt.f32.partialorder %v81_v27, %v82_v54 }
  0x14   :  { %v86_v59 = vmul.f32 %v85_v55, %v84_v12  ;;  %v88_v60 = vsub.f32 %v81_v27, %v87_v56  ;;  %v126_v61 = vadd.f32 %v125_v46, %v110_v53  ;;  %vm102_vm1 = vcmp.lt.f32.partialorder %v101_v28, %v82_v54 }
  0x15   :  { %v104_v62 = vmul.f32 %v103_v17, %v85_v55  ;;  %v105_v63 = vsub.f32 %v101_v28, %v87_v56  ;;  %v156_v0 = vadd.f32 %v155_v37, %v140_v57  ;;  %v117_v2 = vand.u32 2147483647, %v328_v8 }
  0x16   :  { %v89_v1 = vsel %vm394_vm0, %v86_v59, %v88_v60  ;;  %v120_v3 = vmul.f32 %v119_v18, %v85_v55  ;;  %v142_v4 = vadd.f32 %v141_v47, %v126_v61  ;;  %v133_v6 = vand.u32 2147483647, %v341_v13 }
  0x17   :  { %v106_v5 = vsel %vm102_vm1, %v104_v62, %v105_v63  ;;  %v136_v7 = vmul.f32 %v135_v24, %v85_v55  ;;  %v172_v9 = vadd.f32 %v171_v38, %v156_v0  ;;  %vm118_vm2 = vcmp.lt.f32.partialorder %v117_v2, %v82_v54 }
  0x18   :  { %v111_v10 = vadd.f32 %v106_v5, %v89_v1  ;;  %v121_v11 = vsub.f32 %v117_v2, %v87_v56  ;;  %v158_v12 = vadd.f32 %v157_v48, %v142_v4  ;;  %vm402_vm3 = vcmp.lt.f32.partialorder %v133_v6, %v82_v54 }
  0x19   :  { %v137_v15 = vsub.f32 %v133_v6, %v87_v56  ;;  %v149_v16 = vand.u32 2147483647, %v356_v19  ;;  %v188_v17 = vadd.f32 %v187_v40, %v172_v9  ;;  %v152_v18 = vmul.f32 %v151_v30, %v85_v55 }
  0x1a   :  { %v122_v8 = vsel %vm118_vm2, %v120_v3, %v121_v11  ;;  %v165_v21 = vand.u32 2147483647, %v358_v20  ;;  %v174_v22 = vadd.f32 %v173_v50, %v158_v12  ;;  %v168_v28 = vmul.f32 %v167_v31, %v85_v55 }
  0x1b   :  { %v127_v13 = vadd.f32 %v122_v8, %v111_v10  ;;  %v138_v23 = vsel %vm402_vm3, %v136_v7, %v137_v15  ;;  %vm150_vm4 = vcmp.lt.f32.partialorder %v149_v16, %v82_v54  ;;  %v204_v24 = vadd.f32 %v203_v43, %v188_v17 }
  0x1c   :  { %v153_v26 = vsub.f32 %v149_v16, %v87_v56  ;;  %vm410_vm5 = vcmp.lt.f32.partialorder %v165_v21, %v82_v54  ;;  %v190_v29 = vadd.f32 %v189_v51, %v174_v22  ;;  %v169_v33 = vsub.f32 %v165_v21, %v87_v56 }
  0x1d   :  { %v143_v19 = vadd.f32 %v138_v23, %v127_v13  ;;  %v181_v30 = vand.u32 2147483647, %v373_v25  ;;  %v184_v20 = vmul.f32 %v183_v39, %v85_v55  ;;  %v197_v35 = vand.u32 2147483647, %v383_v32  ;;  %210 = vst [vmem:[%s431_s3] sm:$0xff] %v204_v24 }
  0x1e   :  { %v154_v34 = vsel %vm150_vm4, %v152_v18, %v153_v26  ;;  %v206_v36 = vadd.f32 %v205_v52, %v190_v29  ;;  %v170_v38 = vsel %vm410_vm5, %v168_v28, %v169_v33  ;;  %v200_v40 = vmul.f32 %v389_v42, %v85_v55 }
  0x1f   :  { %v159_v37 = vadd.f32 %v154_v34, %v143_v19  ;;  %vm182_vm6 = vcmp.lt.f32.partialorder %v181_v30, %v82_v54  ;;  %v185_v31 = vsub.f32 %v181_v30, %v87_v56  ;;  %vm198_vm7 = vcmp.lt.f32.partialorder %v197_v35, %v82_v54 }
  0x20   :  { %v201_v41 = vsub.f32 %v197_v35, %v87_v56  ;;  %213 = vst [vmem:[%s432_s4] sm:$0xff] %v206_v36 }
  0x21   :  { %v175_v25 = vadd.f32 %v170_v38, %v159_v37  ;;  %v186_v43 = vsel %vm182_vm6, %v184_v20, %v185_v31 }
  0x22   :  { %v202_v39 = vsel %vm198_vm7, %v200_v40, %v201_v41 }
  0x23   :  { %v191_v32 = vadd.f32 %v186_v43, %v175_v25 }
  0x25   :  { %v207_v44 = vadd.f32 %v202_v39, %v191_v32 }
  0x27   :  { %216 = vst [vmem:[%s433_s5] sm:$0xff] %v207_v44 }

// kernel: smooth_l1_ks_loss.5
= control target key start
LH: loop header
LB: loop body
LE: loop exit
PB: predicated region body
PF: predicated region fallthrough
CT: control target
= control target key end

     0   :  { %s642_s21 = smov [#allocation3]   ;;  %s1047_s0 = inlined_call_operand.vmem [shape: f32[2], index: 0, kind: input, shape index: {}]   ;;  %s1048_s1 = inlined_call_operand.vmem [shape: f32[8,8,128], index: 1, kind: input, shape index: {}]   ;;  %s1049_s2 = inlined_call_operand.vmem [shape: f32[8,8,128], index: 2, kind: input, shape index: {}]   ;;  %s1050_s3 = inlined_call_operand.vmem [shape: f32[8,8,128], index: 3, kind: input, shape index: {}]   ;;  %s1051_s4 = inlined_call_operand.vmem [shape: f32[8,8,128], index: 4, kind: input, shape index: {}]   ;;  %s1052_s5 = inlined_call_operand.vmem [shape: f32[1,8,128], index: 5, kind: output, shape index: {}]  }
   0x1   :  { %s11_s20 = sshll.u32 %s1047_s0, 4  ;;  %s12_s20 = int_to_ptr.vmem [resolvable:$true] %s11_s20 }
   0x2   :  { %14 = dma.vmem_to_smem %s12_s20, 16, %s642_s21, [#allocation2] }
   0x3   :  { %640 = dma.done.wait [#allocation2], 16 }
   0x4   :  { %641 = vsyncadd [#allocation2], 4294967280 }
   0x5   :  { %17 = sfence }
   0x6   :  { %s119_s22 = sld [smem:[#allocation3]]  ;;  %v679_v0 = vld [vmem:[%s1048_s1] sm:$0xff]  ;;  %v684_v1 = vld [vmem:[%s1048_s1 + $0x8] sm:$0xff]  ;;  %v689_v2 = vld [vmem:[%s1048_s1 + $0x10] sm:$0xff] }
   0x7   :  { %s565_s23 = sld [smem:[#allocation3 + $0x1]]  ;;  %v694_v3 = vld [vmem:[%s1048_s1 + $0x18] sm:$0xff]  ;;  %v738_v21 = vld [vmem:[%s1048_s1 + $0x20] sm:$0xff]  ;;  %v746_v27 = vld [vmem:[%s1048_s1 + $0x28] sm:$0xff] }
   0xc   :  { %v696_v4 = vstv %s119_s22 }
   0xd   :  { %v123_v5 = vsub.f32 %v679_v0, %v696_v4  ;;  %v700_v6 = vstv %s565_s23  ;;  %v172_v7 = vsub.f32 %v684_v1, %v696_v4  ;;  %v224_v8 = vsub.f32 %v689_v2, %v696_v4 }
   0xe   :  { %v276_v9 = vsub.f32 %v694_v3, %v696_v4  ;;  %v328_v25 = vsub.f32 %v738_v21, %v696_v4  ;;  %v380_v30 = vsub.f32 %v746_v27, %v696_v4 }
   0xf   :  { %v709_v10 = vmul.f32 %v700_v6, %v123_v5  ;;  %v712_v11 = vmul.f32 %v172_v7, %v700_v6  ;;  %v715_v12 = vmul.f32 %v224_v8, %v700_v6 }
  0x10   :  { %v718_v13 = vmul.f32 %v276_v9, %v700_v6  ;;  %v749_v29 = vmul.f32 %v328_v25, %v700_v6  ;;  %v757_v39 = vmul.f32 %v380_v30, %v700_v6 }
  0x11   :  { %v721_v14 = vand.u32 2147483647, %v709_v10  ;;  %v724_v15 = vand.u32 2147483647, %v712_v11  ;;  %v727_v16 = vand.u32 2147483647, %v715_v12 }
  0x12   :  { %v730_v17 = vand.u32 2147483647, %v718_v13  ;;  %v754_v38 = vand.u32 2147483647, %v749_v29 }
  0x13   :  { %v127_v18 = vmul.f32 0.3275911, %v721_v14  ;;  %v175_v19 = vmul.f32 0.3275911, %v724_v15  ;;  %v227_v20 = vmul.f32 0.3275911, %v727_v16 }
  0x14   :  { %v279_v24 = vmul.f32 0.3275911, %v730_v17 }
  0x15   :  { %v128_v22 = vadd.f32 1.0, %v127_v18  ;;  %v176_v23 = vadd.f32 1.0, %v175_v19  ;;  %v228_v26 = vadd.f32 1.0, %v227_v20 }
  0x16   :  { %v280_v28 = vadd.f32 1.0, %v279_v24 }
  0x17   :  { %596 = vrcp.f32 %v128_v22  ;;  %v138_v32 = vand.u32 2147483647, %v128_v22  ;;  %v140_v35 = vand.u32 2147483648, %v128_v22  ;;  %v186_v36 = vand.u32 2147483647, %v176_v23 }
  0x18   :  { %598 = vrcp.f32 %v176_v23  ;;  %vm134_vm0 = vweird.f32 %v128_v22  ;;  %v188_v41 = vand.u32 2147483648, %v176_v23  ;;  %vm182_vm3 = vweird.f32 %v176_v23 }
  0x19   :  { %600 = vrcp.f32 %v228_v26  ;;  %vm759_vm2 = vcmp.eq.f32.partialorder %v138_v32, 8.507059e+37  ;;  %v141_v46 = vor.u32 1.1754944e-38, %v140_v35  ;;  %vm763_vm5 = vcmp.eq.f32.partialorder %v186_v36, 8.507059e+37 }
  0x1a   :  { %602 = vrcp.f32 %v280_v28  ;;  %vm234_vm6 = vweird.f32 %v228_v26  ;;  %v238_v52 = vand.u32 2147483647, %v228_v26  ;;  %v240_v53 = vand.u32 2147483648, %v228_v26 }
  0x1b   :  { %v189_v56 = vor.u32 1.1754944e-38, %v188_v41  ;;  %vm286_vm9 = vweird.f32 %v280_v28  ;;  %v292_v60 = vand.u32 2147483648, %v280_v28  ;;  %v290_v63 = vand.u32 2147483647, %v280_v28 }
  0x1c   :  { %v241_v9 = vor.u32 1.1754944e-38, %v240_v53  ;;  %vm239_vm13 = vcmp.eq.f32.partialorder %v238_v52, 8.507059e+37  ;;  %v795_v36 = vand.u32 2147483647, %v757_v39  ;;  %v201_v53 = vsub.f32 0.0, %v724_v15 }
  0x1d   :  { %v597_v31 = vpop.eup %596  ;;  %v293_v25 = vor.u32 1.1754944e-38, %v292_v60  ;;  %vm291_vm15 = vcmp.eq.f32.partialorder %v290_v63, 8.507059e+37 }
  0x1e   :  { %v599_v33 = vpop.eup %598  ;;  %v130_v34 = vmul.f32 %v597_v31, %v128_v22  ;;  %vm135_vm1 = vweird.f32 %v597_v31  ;;  %v331_v22 = vmul.f32 0.3275911, %v754_v38 }
  0x1f   :  { %v178_v37 = vmul.f32 %v599_v33, %v176_v23  ;;  %vm183_vm4 = vweird.f32 %v599_v33  ;;  %v601_v44 = vpop.eup %600  ;;  %vm767_vm7 = vmor %vm134_vm0, %vm135_vm1 }
  0x20   :  { %v131_v40 = vsub.f32 1.0, %v130_v34  ;;  %v603_v48 = vpop.eup %602  ;;  %v230_v51 = vmul.f32 %v601_v44, %v228_v26  ;;  %vm771_vm8 = vmor %vm182_vm3, %vm183_vm4  ;;  %vm235_vm10 = vweird.f32 %v601_v44  ;;  %v332_v32 = vadd.f32 1.0, %v331_v22 }
  0x21   :  { %v179_v43 = vsub.f32 1.0, %v178_v37  ;;  %v282_v57 = vmul.f32 %v603_v48, %v280_v28  ;;  %vm287_vm11 = vweird.f32 %v603_v48  ;;  %vm236_vm12 = vmor %vm234_vm6, %vm235_vm10 }
  0x22   :  { %v132_v45 = vmul.f32 %v597_v31, %v131_v40  ;;  %v231_v59 = vsub.f32 1.0, %v230_v51  ;;  %vm288_vm14 = vmor %vm286_vm9, %vm287_vm11  ;;  %604 = vrcp.f32 %v332_v32  ;;  %vm338_vm0 = vweird.f32 %v332_v32 }
  0x23   :  { %v180_v50 = vmul.f32 %v599_v33, %v179_v43  ;;  %v283_v62 = vsub.f32 1.0, %v282_v57  ;;  %v383_v43 = vmul.f32 0.3275911, %v795_v36 }
  0x24   :  { %v133_v54 = vadd.f32 %v597_v31, %v132_v45  ;;  %v232_v8 = vmul.f32 %v601_v44, %v231_v59 }
  0x25   :  { %v181_v58 = vadd.f32 %v599_v33, %v180_v50  ;;  %v284_v20 = vmul.f32 %v603_v48, %v283_v62  ;;  %v813_v55 = vadd.f32 1.0, %v383_v43 }
  0x26   :  { %v137_v61 = vsel %vm767_vm7, %v597_v31, %v133_v54  ;;  %v233_v24 = vadd.f32 %v601_v44, %v232_v8  ;;  %v344_v54 = vand.u32 2147483648, %v332_v32 }
  0x27   :  { %v779_v5 = vsel %vm759_vm2, %v141_v46, %v137_v61  ;;  %v185_v7 = vsel %vm771_vm8, %v599_v33, %v181_v58  ;;  %v285_v31 = vadd.f32 %v603_v48, %v284_v20  ;;  %v342_v58 = vand.u32 2147483647, %v332_v32 }
  0x28   :  { %v144_v18 = vmul.f32 1.0614054, %v779_v5  ;;  %v786_v19 = vsel %vm763_vm5, %v189_v56, %v185_v7  ;;  %v237_v34 = vsel %vm236_vm12, %v601_v44, %v233_v24  ;;  %v807_v44 = vld [vmem:[%s1048_s1 + $0x30] sm:$0xff]  ;;  %v605_v46 = vpop.eup %604  ;;  %606 = vrcp.f32 %v813_v55 }
  0x29   :  { %v192_v23 = vmul.f32 1.0614054, %v786_v19  ;;  %v792_v35 = vsel %vm239_vm13, %v241_v9, %v237_v34  ;;  %v289_v26 = vsel %vm288_vm14, %v603_v48, %v285_v31  ;;  %v153_v48 = vsub.f32 0.0, %v721_v14 }
  0x2a   :  { %v145_v30 = vadd.f32 -1.4531521, %v144_v18  ;;  %v244_v37 = vmul.f32 1.0614054, %v792_v35  ;;  %v798_v40 = vsel %vm291_vm15, %v293_v25, %v289_v26  ;;  %v334_v51 = vmul.f32 %v605_v46, %v332_v32 }
  0x2b   :  { %v193_v33 = vadd.f32 -1.4531521, %v192_v23  ;;  %v296_v42 = vmul.f32 1.0614054, %v798_v40  ;;  %v432_v52 = vsub.f32 %v807_v44, %v696_v4  ;;  %vm339_vm1 = vweird.f32 %v605_v46 }
  0x2c   :  { %v146_v28 = vmul.f32 %v145_v30, %v779_v5  ;;  %v245_v45 = vadd.f32 -1.4531521, %v244_v37  ;;  %v335_v57 = vsub.f32 1.0, %v334_v51  ;;  %v154_v60 = vmul.f32 %v153_v48, %v721_v14  ;;  %vm822_vm2 = vmor %vm338_vm0, %vm339_vm1 }
  0x2d   :  { %v194_v41 = vmul.f32 %v193_v33, %v786_v19  ;;  %v297_v50 = vadd.f32 -1.4531521, %v296_v42  ;;  %v253_v7 = vsub.f32 0.0, %v727_v16  ;;  %v345_v9 = vor.u32 1.1754944e-38, %v344_v54 }
  0x2e   :  { %v147_v47 = vadd.f32 1.4214138, %v146_v28  ;;  %v246_v56 = vmul.f32 %v245_v45, %v792_v35  ;;  %v336_v63 = vmul.f32 %v605_v46, %v335_v57  ;;  %v827_v18 = vmul.f32 %v432_v52, %v700_v6  ;;  %v607_v33 = vpop.eup %606 }
  0x2f   :  { %v195_v49 = vadd.f32 1.4214138, %v194_v41  ;;  %v298_v62 = vmul.f32 %v297_v50, %v798_v40  ;;  %v305_v14 = vsub.f32 0.0, %v730_v17  ;;  %vm343_vm3 = vcmp.eq.f32.partialorder %v342_v58, 8.507059e+37 }
  0x30   :  { %v148_v59 = vmul.f32 %v147_v47, %v779_v5  ;;  %v247_v20 = vadd.f32 1.4214138, %v246_v56  ;;  %v337_v22 = vadd.f32 %v605_v46, %v336_v63  ;;  %v155_v24 = vmul.f32 1.442695, %v154_v60  ;;  %v851_v47 = vld [vmem:[%s1048_s1 + $0x38] sm:$0xff] }
  0x31   :  { %v196_v61 = vmul.f32 %v195_v49, %v786_v19  ;;  %v202_v30 = vmul.f32 %v201_v53, %v724_v15  ;;  %v299_v31 = vadd.f32 1.4214138, %v298_v62  ;;  %v254_v34 = vmul.f32 %v253_v7, %v727_v16  ;;  %v164_v16 = vld [vmem:[%s1049_s2] sm:$0xff] }
  0x32   :  { %v149_v23 = vadd.f32 -0.28449672, %v148_v59  ;;  %v341_v32 = vsel %vm822_vm2, %v605_v46, %v337_v22  ;;  %v837_v37 = vand.u32 2147483647, %v827_v18  ;;  %v248_v28 = vmul.f32 %v247_v20, %v792_v35 }
  0x33   :  { %v197_v25 = vadd.f32 -0.28449672, %v196_v61  ;;  %v834_v26 = vsel %vm343_vm3, %v345_v9, %v341_v32  ;;  %v306_v41 = vmul.f32 %v305_v14, %v730_v17  ;;  %v386_v15 = vmul.f32 %v607_v33, %v813_v55  ;;  %v569_v17 = vld [vmem:[%s1049_s2 + $0x8] sm:$0xff] }
  0x34   :  { %v348_v42 = vmul.f32 1.0614054, %v834_v26  ;;  %v150_v43 = vmul.f32 %v149_v23, %v779_v5  ;;  %608 = vpow2.f32 %v155_v24  ;;  %v203_v46 = vmul.f32 1.442695, %v202_v30  ;;  %v568_v24 = vld [vmem:[%s1051_s4 + $0x8] sm:$0xff] }
  0x35   :  { %v198_v45 = vmul.f32 %v197_v25, %v786_v19  ;;  %v300_v48 = vmul.f32 %v299_v31, %v798_v40  ;;  %v387_v50 = vsub.f32 1.0, %v386_v15  ;;  %v396_v51 = vand.u32 2147483648, %v813_v55 }
  0x36   :  { %v349_v49 = vadd.f32 -1.4531521, %v348_v42  ;;  %vm390_vm4 = vweird.f32 %v813_v55  ;;  %vm391_vm5 = vweird.f32 %v607_v33  ;;  %v394_v52 = vand.u32 2147483647, %v813_v55 }
  0x37   :  { %v435_v53 = vmul.f32 0.3275911, %v837_v37  ;;  %v165_v54 = vsub.f32 %v679_v0, %v164_v16  ;;  %v249_v56 = vadd.f32 -0.28449672, %v248_v28  ;;  %v484_v58 = vsub.f32 %v851_v47, %v696_v4  ;;  %vm867_vm6 = vmor %vm390_vm4, %vm391_vm5 }
  0x38   :  { %v350_v57 = vmul.f32 %v349_v49, %v834_v26  ;;  %610 = vpow2.f32 %v203_v46  ;;  %v216_v59 = vsub.f32 %v684_v1, %v569_v17  ;;  %v357_v60 = vsub.f32 0.0, %v754_v38  ;;  %v163_v1 = vld [vmem:[%s1051_s4] sm:$0xff] }
  0x39   :  { %v388_v61 = vmul.f32 %v607_v33, %v387_v50  ;;  %v151_v62 = vadd.f32 0.2548296, %v150_v43  ;;  %v397_v7 = vor.u32 1.1754944e-38, %v396_v51  ;;  %v871_v0 = vadd.f32 1.0, %v435_v53  ;;  %v162_v53 = vld [vmem:[%s1050_s3] sm:$0xff] }
  0x3a   :  { %v351_v63 = vadd.f32 1.4214138, %v350_v57  ;;  %v609_v8 = vpop.eup %608  ;;  %v199_v9 = vadd.f32 0.2548296, %v198_v45  ;;  %v301_v20 = vadd.f32 -0.28449672, %v300_v48  ;;  %v250_v4 = vmul.f32 %v249_v56, %v792_v35 }
  0x3b   :  { %v389_v14 = vadd.f32 %v607_v33, %v388_v61  ;;  %vm395_vm7 = vcmp.eq.f32.partialorder %v394_v52, 8.507059e+37  ;;  %v255_v22 = vmul.f32 1.442695, %v254_v34  ;;  %612 = vrcp.f32 %v871_v0  ;;  %v573_v34 = vld [vmem:[%s1049_s2 + $0x10] sm:$0xff] }
  0x3c   :  { %v879_v23 = vmul.f32 %v484_v58, %v700_v6  ;;  %v307_v25 = vmul.f32 1.442695, %v306_v41  ;;  %v358_v30 = vmul.f32 %v357_v60, %v754_v38  ;;  %v152_v32 = vmul.f32 %v151_v62, %v779_v5 }
  0x3d   :  { %v393_v31 = vsel %vm867_vm6, %v607_v33, %v389_v14  ;;  %v352_v28 = vmul.f32 %v351_v63, %v834_v26  ;;  %v409_v42 = vsub.f32 0.0, %v795_v36  ;;  %v166_v43 = vmul.f32 %v165_v54, %v163_v1  ;;  %v567_v14 = vld [vmem:[%s1050_s3 + $0x8] sm:$0xff] }
  0x3e   :  { %v892_v6 = vsel %vm395_vm7, %v397_v7, %v393_v31  ;;  %v611_v15 = vpop.eup %610  ;;  %v200_v41 = vmul.f32 %v199_v9, %v786_v19  ;;  %v302_v38 = vmul.f32 %v301_v20, %v798_v40  ;;  %v217_v16 = vmul.f32 %v568_v24, %v216_v59 }
  0x3f   :  { %v400_v33 = vmul.f32 1.0614054, %v892_v6  ;;  %v251_v5 = vadd.f32 0.2548296, %v250_v4  ;;  %614 = vpow2.f32 %v255_v22  ;;  %v899_v45 = vand.u32 2147483647, %v879_v23 }
  0x40   :  { %v268_v46 = vsub.f32 %v689_v2, %v573_v34  ;;  %616 = vpow2.f32 %v307_v25  ;;  %v359_v17 = vmul.f32 1.442695, %v358_v30  ;;  %v902_v50 = vmul.f32 %v609_v8, %v152_v32  ;;  %v572_v2 = vld [vmem:[%s1051_s4 + $0x10] sm:$0xff]  ;;  %v577_v25 = vld [vmem:[%s1049_s2 + $0x18] sm:$0xff] }
  0x41   :  { %v401_v48 = vadd.f32 -1.4531521, %v400_v33  ;;  %v613_v49 = vpop.eup %612  ;;  %v353_v51 = vadd.f32 -0.28449672, %v352_v28  ;;  %v410_v19 = vmul.f32 %v409_v42, %v795_v36  ;;  %v487_v52 = vmul.f32 0.3275911, %v899_v45 }
  0x42   :  { %v909_v54 = vmul.f32 %v611_v15, %v200_v41  ;;  %v303_v56 = vadd.f32 0.2548296, %v302_v38  ;;  %v438_v58 = vmul.f32 %v613_v49, %v871_v0  ;;  %vm159_vm8 = vcmp.ge.f32.partialorder %v709_v10, 0.0  ;;  %v571_v28 = vld [vmem:[%s1050_s3 + $0x10] sm:$0xff] }
  0x43   :  { %v402_v57 = vmul.f32 %v401_v48, %v892_v6  ;;  %v252_v36 = vmul.f32 %v251_v5, %v792_v35  ;;  %vm442_vm9 = vweird.f32 %v871_v0  ;;  %v448_v59 = vand.u32 2147483648, %v871_v0 }
  0x44   :  { %v920_v60 = vadd.f32 1.0, %v487_v52  ;;  %v439_v62 = vsub.f32 1.0, %v438_v58  ;;  %vm443_vm10 = vweird.f32 %v613_v49  ;;  %v446_v63 = vand.u32 2147483647, %v871_v0  ;;  %v576_v58 = vld [vmem:[%s1051_s4 + $0x18] sm:$0xff] }
  0x45   :  { %v403_v61 = vadd.f32 1.4214138, %v402_v57  ;;  %v615_v55 = vpop.eup %614  ;;  %v923_v7 = vadd.f32 %v166_v43, %v162_v53  ;;  %v269_v8 = vmul.f32 %v572_v2, %v268_v46  ;;  %v354_v9 = vmul.f32 %v353_v51, %v834_v26  ;;  %vm940_vm11 = vmor %vm442_vm9, %vm443_vm10 }
  0x46   :  { %618 = vpow2.f32 %v359_v17  ;;  %v617_v20 = vpop.eup %616  ;;  %v158_v35 = vsub.f32 1.0, %v902_v50  ;;  %v440_v4 = vmul.f32 %v613_v49, %v439_v62  ;;  %v206_v22 = vsub.f32 1.0, %v909_v54 }
  0x47   :  { %v404_v1 = vmul.f32 %v403_v61, %v892_v6  ;;  %620 = vrcp.f32 %v920_v60  ;;  %v304_v24 = vmul.f32 %v303_v56, %v798_v40  ;;  %v411_v30 = vmul.f32 1.442695, %v410_v19 }
  0x48   :  { %v449_v32 = vor.u32 1.1754944e-38, %v448_v59  ;;  %v257_v34 = vmul.f32 %v615_v55, %v252_v36  ;;  %v441_v40 = vadd.f32 %v613_v49, %v440_v4  ;;  %vm447_vm12 = vcmp.eq.f32.partialorder %v446_v63, 8.507059e+37  ;;  %v593_v4 = vld [vmem:[%s1049_s2 + $0x38] sm:$0xff] }
  0x49   :  { %v405_v42 = vadd.f32 -0.28449672, %v404_v1  ;;  %vm207_vm13 = vcmp.ge.f32.partialorder %v712_v11, 0.0  ;;  %v948_v15 = vadd.f32 %v567_v14, %v217_v16  ;;  %v355_v43 = vadd.f32 0.2548296, %v354_v9 }
  0x4a   :  { %v461_v0 = vsub.f32 0.0, %v837_v37  ;;  %v160_v41 = vsub.f32 0.0, %v158_v35  ;;  %v320_v38 = vsub.f32 %v694_v3, %v577_v25  ;;  %v445_v5 = vsel %vm940_vm11, %v613_v49, %v441_v40 }
  0x4b   :  { %v406_v33 = vmul.f32 %v405_v42, %v892_v6  ;;  %vm259_vm14 = vcmp.ge.f32.partialorder %v715_v12, 0.0  ;;  %v956_v17 = vadd.f32 %v571_v28, %v269_v8  ;;  %622 = vpow2.f32 %v411_v30  ;;  %v584_v12 = vld [vmem:[%s1051_s4 + $0x28] sm:$0xff] }
  0x4c   :  { %v619_v46 = vpop.eup %618  ;;  %v958_v48 = vsel %vm447_vm12, %v449_v32, %v445_v5  ;;  %v208_v50 = vsub.f32 0.0, %v206_v22  ;;  %v258_v51 = vsub.f32 1.0, %v257_v34  ;;  %v309_v19 = vmul.f32 %v617_v20, %v304_v24  ;;  %v580_v34 = vld [vmem:[%s1051_s4 + $0x20] sm:$0xff] }
  0x4d   :  { %v621_v16 = vpop.eup %620  ;;  %v452_v52 = vmul.f32 1.0614054, %v958_v48  ;;  %v356_v3 = vmul.f32 %v355_v43, %v834_v26  ;;  %v407_v53 = vadd.f32 0.2548296, %v406_v33  ;;  %v462_v54 = vmul.f32 %v461_v0, %v837_v37  ;;  %v581_v26 = vld [vmem:[%s1049_s2 + $0x20] sm:$0xff] }
  0x4e   :  { %v490_v49 = vmul.f32 %v621_v16, %v920_v60  ;;  %v161_v2 = vsel %vm159_vm8, %v158_v35, %v160_v41  ;;  %vm311_vm15 = vcmp.ge.f32.partialorder %v718_v13, 0.0  ;;  %v500_v57 = vand.u32 2147483648, %v920_v60 }
  0x4f   :  { %v453_v56 = vadd.f32 -1.4531521, %v452_v52  ;;  %vm494_vm0 = vweird.f32 %v920_v60  ;;  %vm495_vm1 = vweird.f32 %v621_v16  ;;  %v498_v10 = vand.u32 2147483647, %v920_v60 }
  0x50   :  { %v491_v36 = vsub.f32 1.0, %v490_v49  ;;  %v209_v37 = vsel %vm207_vm13, %v206_v22, %v208_v50  ;;  %v260_v59 = vsub.f32 0.0, %v258_v51  ;;  %v310_v61 = vsub.f32 1.0, %v309_v19  ;;  %vm983_vm2 = vmor %vm494_vm0, %vm495_vm1 }
  0x51   :  { %v454_v62 = vmul.f32 %v453_v56, %v958_v48  ;;  %v623_v63 = vpop.eup %622  ;;  %v361_v55 = vmul.f32 %v619_v46, %v356_v3  ;;  %v408_v8 = vmul.f32 %v407_v53, %v892_v6  ;;  %v463_v9 = vmul.f32 1.442695, %v462_v54  ;;  %v575_v6 = vld [vmem:[%s1050_s3 + $0x18] sm:$0xff]  ;;  %v589_v3 = vld [vmem:[%s1049_s2 + $0x30] sm:$0xff] }
  0x52   :  { %v492_v20 = vmul.f32 %v621_v16, %v491_v36  ;;  %v321_v35 = vmul.f32 %v576_v58, %v320_v38  ;;  %v372_v14 = vsub.f32 %v738_v21, %v581_v26  ;;  %v501_v11 = vor.u32 1.1754944e-38, %v500_v57  ;;  %v585_v21 = vld [vmem:[%s1049_s2 + $0x28] sm:$0xff] }
  0x53   :  { %v455_v1 = vadd.f32 1.4214138, %v454_v62  ;;  %v168_v22 = vsub.f32 %v161_v2, %v923_v7  ;;  %v219_v24 = vsub.f32 %v209_v37, %v948_v15  ;;  %vm499_vm3 = vcmp.eq.f32.partialorder %v498_v10, 8.507059e+37  ;;  %v583_v58 = vld [vmem:[%s1050_s3 + $0x28] sm:$0xff] }
  0x54   :  { %v493_v25 = vadd.f32 %v621_v16, %v492_v20  ;;  %v261_v60 = vsel %vm259_vm14, %v258_v51, %v260_v59  ;;  %v312_v30 = vsub.f32 0.0, %v310_v61  ;;  %v513_v7 = vsub.f32 0.0, %v899_v45 }
  0x55   :  { %v456_v31 = vmul.f32 %v455_v1, %v958_v48  ;;  %v362_v32 = vsub.f32 1.0, %v361_v55  ;;  %v413_v28 = vmul.f32 %v623_v63, %v408_v8  ;;  %624 = vpow2.f32 %v463_v9 }
  0x56   :  { %v497_v42 = vsel %vm983_vm2, %v621_v16, %v493_v25  ;;  %v322_v40 = vadd.f32 %v575_v6, %v321_v35  ;;  %v424_v15 = vsub.f32 %v746_v27, %v585_v21  ;;  %v169_v41 = vand.u32 2147483647, %v168_v22  ;;  %v579_v27 = vld [vmem:[%s1050_s3 + $0x20] sm:$0xff] }
  0x57   :  { %v457_v43 = vadd.f32 -0.28449672, %v456_v31  ;;  %v502_v0 = vsel %vm499_vm3, %v501_v11, %v497_v42  ;;  %v220_v38 = vand.u32 2147483647, %v219_v24  ;;  %v271_v33 = vsub.f32 %v261_v60, %v956_v17  ;;  %v592_v31 = vld [vmem:[%s1051_s4 + $0x38] sm:$0xff] }
  0x58   :  { %v504_v5 = vmul.f32 1.0614054, %v502_v0  ;;  %v313_v46 = vsel %vm311_vm15, %v310_v61, %v312_v30  ;;  %v373_v50 = vmul.f32 %v580_v34, %v372_v14  ;;  %v514_v51 = vmul.f32 %v513_v7, %v899_v45  ;;  %v587_v14 = vld [vmem:[%s1050_s3 + $0x30] sm:$0xff] }
  0x59   :  { %v458_v16 = vmul.f32 %v457_v43, %v958_v48  ;;  %v364_v19 = vsub.f32 0.0, %v362_v32  ;;  %v414_v52 = vsub.f32 1.0, %v413_v28  ;;  %vm363_vm4 = vcmp.ge.f32.partialorder %v749_v29, 0.0  ;;  %v588_v29 = vld [vmem:[%s1051_s4 + $0x30] sm:$0xff] }
  0x5a   :  { %v505_v17 = vadd.f32 -1.4531521, %v504_v5  ;;  %v425_v13 = vmul.f32 %v584_v12, %v424_v15  ;;  %v221_v49 = vmax.f32 %v169_v41, %v220_v38  ;;  %v272_v2 = vand.u32 2147483647, %v271_v33  ;;  %v591_v12 = vld [vmem:[%s1050_s3 + $0x38] sm:$0xff] }
  0x5b   :  { %v459_v53 = vadd.f32 0.2548296, %v458_v16  ;;  %v625_v54 = vpop.eup %624  ;;  %v323_v56 = vsub.f32 %v313_v46, %v322_v40  ;;  %v374_v57 = vadd.f32 %v579_v27, %v373_v50  ;;  %v476_v36 = vsub.f32 %v807_v44, %v589_v3 }
  0x5c   :  { %v506_v45 = vmul.f32 %v505_v17, %v502_v0  ;;  %v515_v10 = vmul.f32 1.442695, %v514_v51  ;;  %v365_v37 = vsel %vm363_vm4, %v362_v32, %v364_v19  ;;  %v416_v59 = vsub.f32 0.0, %v414_v52 }
  0x5d   :  { %v460_v26 = vmul.f32 %v459_v53, %v958_v48  ;;  %vm415_vm5 = vcmp.ge.f32.partialorder %v757_v39, 0.0  ;;  %v273_v63 = vmax.f32 %v221_v49, %v272_v2  ;;  %v324_v55 = vand.u32 2147483647, %v323_v56 }
  0x5e   :  { %v507_v61 = vadd.f32 1.4214138, %v506_v45  ;;  %v426_v8 = vadd.f32 %v583_v58, %v425_v13  ;;  %v375_v20 = vsub.f32 %v365_v37, %v374_v57  ;;  %v477_v48 = vmul.f32 %v588_v29, %v476_v36 }
  0x5f   :  { %v465_v62 = vmul.f32 %v625_v54, %v460_v26  ;;  %626 = vpow2.f32 %v515_v10  ;;  %v417_v44 = vsel %vm415_vm5, %v414_v52, %v416_v59  ;;  %vm467_vm6 = vcmp.ge.f32.partialorder %v827_v18, 0.0 }
  0x60   :  { %v508_v9 = vmul.f32 %v507_v61, %v502_v0  ;;  %v325_v11 = vmax.f32 %v273_v63, %v324_v55  ;;  %v376_v24 = vand.u32 2147483647, %v375_v20  ;;  %v427_v6 = vsub.f32 %v417_v44, %v426_v8 }
  0x61   :  { %v466_v35 = vsub.f32 1.0, %v465_v62  ;;  %v478_v21 = vadd.f32 %v587_v14, %v477_v48  ;;  %v528_v25 = vsub.f32 %v851_v47, %v593_v4  ;;  %vm519_vm7 = vcmp.ge.f32.partialorder %v879_v23, 0.0 }
  0x62   :  { %v509_v1 = vadd.f32 -0.28449672, %v508_v9  ;;  %v377_v34 = vmax.f32 %v325_v11, %v376_v24  ;;  %v428_v28 = vand.u32 2147483647, %v427_v6 }
  0x63   :  { %v468_v39 = vsub.f32 0.0, %v466_v35  ;;  %v529_v18 = vmul.f32 %v592_v31, %v528_v25 }
  0x64   :  { %v510_v22 = vmul.f32 %v509_v1, %v502_v0  ;;  %v429_v43 = vmax.f32 %v377_v34, %v428_v28 }
  0x65   :  { %v469_v60 = vsel %vm467_vm6, %v466_v35, %v468_v39  ;;  %v627_v7 = vpop.eup %626  ;;  %v530_v41 = vadd.f32 %v591_v12, %v529_v18 }
  0x66   :  { %v511_v30 = vadd.f32 0.2548296, %v510_v22  ;;  %v479_v42 = vsub.f32 %v469_v60, %v478_v21 }
  0x68   :  { %v512_v32 = vmul.f32 %v511_v30, %v502_v0  ;;  %v480_v47 = vand.u32 2147483647, %v479_v42 }
  0x6a   :  { %v517_v40 = vmul.f32 %v627_v7, %v512_v32  ;;  %v481_v5 = vmax.f32 %v429_v43, %v480_v47 }
  0x6c   :  { %v518_v15 = vsub.f32 1.0, %v517_v40 }
  0x6e   :  { %v520_v38 = vsub.f32 0.0, %v518_v15 }
  0x70   :  { %v521_v33 = vsel %vm519_vm7, %v518_v15, %v520_v38 }
  0x71   :  { %v531_v46 = vsub.f32 %v521_v33, %v530_v41 }
  0x73   :  { %v532_v0 = vand.u32 2147483647, %v531_v46 }
  0x75   :  { %v533_v50 = vmax.f32 %v481_v5, %v532_v0 }
  0x77   :  { %536 = vst [vmem:[%s1052_s5] sm:$0xff] %v533_v50 }

</bundles_post_ra>
